<compile_context>
chip_gen: v5e
topology: v5e:2x2
jax: 0.10.0
libtpu: 0.0.40
codegen_flags: <defaults>
</compile_context>

<pallas_src>
import jax
import jax.numpy as jnp
import numpy as np
from jax.experimental import pallas as pl
from jax.experimental.pallas import tpu as pltpu


def _round_up(x, m):
    return (x + m - 1) // m * m


# --------------------------------------------------------------------------
# Fused multi-layer LSTM kernel (single invocation, grid=())
# --------------------------------------------------------------------------
def fused_lstm_kernel(x_ref, w_ref, b_ref, h0_ref, out_ref, buf_ref):
    """x_ref:  (T, Npad, Epad) f32   time-major, batch/embed pre-padded
       w_ref:  (L, Epad+H, 4H) bf16  stacked [w_ih ; 0-pad ; w_hh] per layer
       b_ref:  (L, 1, 4H)      f32   combined bias (b_ih + b_hh) per layer
       h0_ref: (Npad, H)       f32   initial hidden (same for every layer)
       out_ref:(T, Npad, H)    f32   top-layer hidden states
       buf_ref:(T, Npad, Epad) f32   VMEM scratch holding inter-layer acts."""
    T, Npad, Epad = x_ref.shape
    L = w_ref.shape[0]
    H = h0_ref.shape[1]
    G = 4 * H

    # Lane mask selecting the "g" gate (PyTorch gate order [i, f, g, o]).
    lane = jax.lax.broadcasted_iota(jnp.int32, (Npad, G), dimension=1)
    g_mask = (lane >= 2 * H) & (lane < 3 * H)

    # T and L are tiny & static here -> full Python unroll.  For long T use
    # lax.fori_loop with (h, c) carry instead.
    for l in range(L):
        w_l = w_ref[l]            # (Epad+H, 4H) bf16
        b_l = b_ref[l]            # (1, 4H)      f32
        h = h0_ref[...]           # (Npad, H)
        c = jnp.zeros((Npad, H), jnp.float32)

        for t in range(T):
            x_t = x_ref[t] if l == 0 else buf_ref[t]        # (Npad, Epad)
            xh = jnp.concatenate([x_t, h], axis=-1)          # (Npad, Epad+H)
            gates = jnp.dot(xh.astype(jnp.bfloat16), w_l,
                            preferred_element_type=jnp.float32) + b_l
            # Full-width EUP passes + lane select (whole-vreg ops).
            act = jnp.where(g_mask, jnp.tanh(gates), jax.nn.sigmoid(gates))
            i_g = act[:, 0:H]
            f_g = act[:, H:2 * H]
            g_g = act[:, 2 * H:3 * H]
            o_g = act[:, 3 * H:4 * H]
            c = f_g * c + i_g * g_g
            h = o_g * jnp.tanh(c)
            if l == L - 1:
                out_ref[t] = h.astype(out_ref.dtype)
            else:
                if Epad > H:
                    buf_ref[t] = jnp.concatenate(
                        [h, jnp.zeros((Npad, Epad - H), h.dtype)], axis=-1)
                else:
                    buf_ref[t] = h


def fused_lstm(x, w_stacked, b_stacked, h0):
    T, Npad, Epad = x.shape
    L, K, G = w_stacked.shape
    H = h0.shape[-1]
    return pl.pallas_call(
        fused_lstm_kernel,
        out_shape=jax.ShapeDtypeStruct((T, Npad, H), jnp.float32),
        grid=(),
        in_specs=[
            pl.BlockSpec((T, Npad, Epad), lambda: (0, 0, 0)),
            pl.BlockSpec((L, K, G), lambda: (0, 0, 0)),
            pl.BlockSpec((L, 1, G), lambda: (0, 0, 0)),
            pl.BlockSpec((Npad, H), lambda: (0, 0)),
        ],
        out_specs=pl.BlockSpec((T, Npad, H), lambda: (0, 0, 0)),
        scratch_shapes=[pltpu.VMEM((T, Npad, Epad), jnp.float32)],
    )(x, w_stacked, b_stacked, h0)


# --------------------------------------------------------------------------
# Output projection: (M, H) @ (H, Vpad) + b, tiled over M (parallel on v7x)
# --------------------------------------------------------------------------
def proj_kernel(x_ref, w_ref, b_ref, o_ref):
    x_bf = x_ref[...].astype(jnp.bfloat16)
    o_ref[...] = (jnp.dot(x_bf, w_ref[...],
                          preferred_element_type=jnp.float32) + b_ref[...])


def vocab_projection(x, w, b):
    """x: (Mpad, H) f32 (Mpad % 16 == 0), w: (H, Vpad) bf16, b: (1, Vpad)."""
    Mpad, H = x.shape
    Vpad = w.shape[-1]
    tile_m = Mpad // 2                      # two blocks -> both TCs on v7x
    return pl.pallas_call(
        proj_kernel,
        out_shape=jax.ShapeDtypeStruct((Mpad, Vpad), jnp.float32),
        grid=(Mpad // tile_m,),
        in_specs=[
            pl.BlockSpec((tile_m, H), lambda i: (i, 0)),
            pl.BlockSpec((H, Vpad), lambda i: (0, 0)),
            pl.BlockSpec((1, Vpad), lambda i: (0, 0)),
        ],
        out_specs=pl.BlockSpec((tile_m, Vpad), lambda i: (i, 0)),
        compiler_params=pltpu.CompilerParams(
            dimension_semantics=("parallel",)),
    )(x, w, b)


# --------------------------------------------------------------------------
# Parameter init (raw, PyTorch-equivalent layout) and one-time packing
# --------------------------------------------------------------------------
def init_params(key, vocab_size, embed_size, hidden_size, num_layers):
    keys = jax.random.split(key, 4 + 3 * num_layers)
    scale = 0.1

    embedding = scale * jax.random.normal(keys[0], (vocab_size, embed_size),
                                          jnp.float32)
    embedding = embedding.at[0].set(0.0)      # padding_idx = PAD_INDEX (0)

    w_ih, w_hh, b = [], [], []
    for l in range(num_layers):
        e_in = embed_size if l == 0 else hidden_size
        w_ih.append(scale * jax.random.normal(keys[1 + 3 * l],
                                              (e_in, 4 * hidden_size),
                                              jnp.float32))
        w_hh.append(scale * jax.random.normal(keys[2 + 3 * l],
                                              (hidden_size, 4 * hidden_size),
                                              jnp.float32))
        # combined bias b_ih + b_hh
        b.append(scale * jax.random.normal(keys[3 + 3 * l],
                                           (1, 4 * hidden_size), jnp.float32))

    w_out = scale * jax.random.normal(keys[-2], (hidden_size, vocab_size),
                                      jnp.float32)
    b_out = scale * jax.random.normal(keys[-1], (1, vocab_size), jnp.float32)

    return {"embedding": embedding, "w_ih": w_ih, "w_hh": w_hh, "b": b,
            "w_out": w_out, "b_out": b_out}


def pack_params(raw, embed_size, hidden_size, num_layers, vocab_size):
    """One-time packing into the kernel-friendly layout (bf16 weights,
    stacked [w_ih; w_hh], vocab padded to a multiple of 128)."""
    E, H, L, V = embed_size, hidden_size, num_layers, vocab_size
    Epad = max(E, H)
    K = Epad + H
    w_stacked = jnp.zeros((L, K, 4 * H), jnp.float32)
    b_stacked = jnp.zeros((L, 1, 4 * H), jnp.float32)
    for l in range(L):
        e_in = E if l == 0 else H
        w_stacked = w_stacked.at[l, :e_in, :].set(raw["w_ih"][l])
        w_stacked = w_stacked.at[l, Epad:Epad + H, :].set(raw["w_hh"][l])
        b_stacked = b_stacked.at[l, 0, :].set(raw["b"][l][0])

    Vpad = _round_up(V, 128)
    w_out = jnp.zeros((H, Vpad), jnp.float32).at[:, :V].set(raw["w_out"])
    b_out = jnp.zeros((1, Vpad), jnp.float32).at[:, :V].set(raw["b_out"])

    return {"embedding": raw["embedding"],
            "w_stacked": w_stacked.astype(jnp.bfloat16),
            "b_stacked": b_stacked,
            "w_out": w_out.astype(jnp.bfloat16),
            "b_out": b_out,
            "embed_size": E, "hidden_size": H, "num_layers": L,
            "vocab_size": V, "e_pad": Epad, "v_pad": Vpad}


# --------------------------------------------------------------------------
# Module wrapper (training-branch forward of GenerativeDecoder)
# --------------------------------------------------------------------------
def generative_decoder_forward(packed, encoder_output, ans_in):
    """encoder_output: (B, R, H) f32, ans_in: (B, R, T) int32 token ids.
       Returns (B*R, T, V) word scores (pre-softmax), as in training mode."""
    B, R, T = ans_in.shape
    H = packed["hidden_size"]
    E = packed["embed_size"]
    Epad = packed["e_pad"]
    V = packed["vocab_size"]

    N = B * R
    Npad = _round_up(N, 8)                   # sublane-dense batch

    # glue: embedding lookup (gather) + layout padding
    tokens = ans_in.reshape(N, T)
    emb = jnp.take(packed["embedding"], tokens, axis=0)        # (N, T, E)
    x = jnp.transpose(emb, (1, 0, 2))                          # (T, N, E)
    x = jnp.pad(x, ((0, 0), (0, Npad - N), (0, Epad - E)))     # (T, Npad, Epad)

    h0 = encoder_output.reshape(N, H)
    h0 = jnp.pad(h0, ((0, Npad - N), (0, 0)))                  # (Npad, H)

    # hot path: fused multi-layer LSTM (time + layer loops inside the kernel)
    lstm_out = fused_lstm(x, packed["w_stacked"], packed["b_stacked"], h0)

    # TODO(synk): nn.Dropout skipped (identity).

    # hot path: output projection to (padded) vocabulary
    flat = jnp.transpose(lstm_out, (1, 0, 2)).reshape(Npad * T, H)
    M = Npad * T
    Mpad = _round_up(M, 16)
    flat = jnp.pad(flat, ((0, Mpad - M), (0, 0)))

    scores = vocab_projection(flat, packed["w_out"], packed["b_out"])
    scores = scores[:M].reshape(Npad, T, -1)[:N, :, :V]        # (N, T, V)
    return scores


# --------------------------------------------------------------------------
# Pure-JAX reference (mirrors the bf16-operand / f32-accumulate choice)
# --------------------------------------------------------------------------
def reference_forward(raw, encoder_output, ans_in):
    B, R, T = ans_in.shape
    H = encoder_output.shape[-1]
    L = len(raw["w_ih"])
    N = B * R

    tokens = ans_in.reshape(N, T)
    emb = jnp.take(raw["embedding"], tokens, axis=0)           # (N, T, E)
    h0 = encoder_output.reshape(N, H)

    layer_in = emb
    for l in range(L):
        w_ih = raw["w_ih"][l].astype(jnp.bfloat16)
        w_hh = raw["w_hh"][l].astype(jnp.bfloat16)
        b = raw["b"][l]

        def step(carry, x_t, w_ih=w_ih, w_hh=w_hh, b=b):
            h, c = carry
            gates = (jnp.dot(x_t.astype(jnp.bfloat16), w_ih,
                             preferred_element_type=jnp.float32)
                     + jnp.dot(h.astype(jnp.bfloat16), w_hh,
                               preferred_element_type=jnp.float32)
                     + b[0])
            i_g = jax.nn.sigmoid(gates[:, 0 * H:1 * H])
            f_g = jax.nn.sigmoid(gates[:, 1 * H:2 * H])
            g_g = jnp.tanh(gates[:, 2 * H:3 * H])
            o_g = jax.nn.sigmoid(gates[:, 3 * H:4 * H])
            c_new = f_g * c + i_g * g_g
            h_new = o_g * jnp.tanh(c_new)
            return (h_new, c_new), h_new

        c0 = jnp.zeros_like(h0)
        _, hs = jax.lax.scan(step, (h0, c0), jnp.transpose(layer_in, (1, 0, 2)))
        layer_in = jnp.transpose(hs, (1, 0, 2))

    flat = layer_in.reshape(N * T, H)
    scores = (jnp.dot(flat.astype(jnp.bfloat16),
                      raw["w_out"].astype(jnp.bfloat16),
                      preferred_element_type=jnp.float32)
              + raw["b_out"][0])
    return scores.reshape(N, T, -1)


# --------------------------------------------------------------------------
if __name__ == "__main__":
    # Small config consistent with the module's __init__.
    VOCAB = 48          # len(vocabulary)
    EMBED = 16          # word_embedding_size
    HIDDEN = 32         # lstm_hidden_size
    NUM_LAYERS = 2      # lstm_num_layers
    B, R, T = 2, 3, 6   # batch_size, num_rounds, max_sequence_length

    key = jax.random.PRNGKey(0)
    k_params, k_enc, k_tok = jax.random.split(key, 3)

    raw = init_params(k_params, VOCAB, EMBED, HIDDEN, NUM_LAYERS)
    packed = pack_params(raw, EMBED, HIDDEN, NUM_LAYERS, VOCAB)

    encoder_output = jax.random.normal(k_enc, (B, R, HIDDEN), jnp.float32)
    ans_in = jax.random.randint(k_tok, (B, R, T), 0, VOCAB, dtype=jnp.int32)

    out = generative_decoder_forward(packed, encoder_output, ans_in)
    out = jax.block_until_ready(out)

    ref = jax.block_until_ready(reference_forward(raw, encoder_output, ans_in))

    assert out.shape == (B * R, T, VOCAB), out.shape
    # bf16 matmul operands => compare at bf16-appropriate tolerance.
    np.testing.assert_allclose(np.asarray(out), np.asarray(ref),
                               rtol=2e-2, atol=2e-2)
    print("KERNEL_OK")
</pallas_src>

<mosaic_0001>
module attributes {stable_mosaic.version = 11 : i64} {
  func.func @fused_lstm_kernel(%arg0: memref<6x8x32xf32, #tpu.memory_space<vmem>>, %arg1: memref<2x64x128xbf16, #tpu.memory_space<vmem>>, %arg2: memref<2x1x128xf32, #tpu.memory_space<vmem>>, %arg3: memref<8x32xf32, #tpu.memory_space<vmem>>, %arg4: memref<6x8x32xf32, #tpu.memory_space<vmem>>, %arg5: memref<6x8x32xf32, #tpu.memory_space<vmem>>) attributes {dimension_semantics = [], scalar_prefetch = 0 : i64, scratch_operands = 1 : i64, tpu.core_type = #tpu.core_type<tc>} {
    %0 = tpu.iota {dimensions = array<i32: 1>} : vector<8x128xi32>
    %c64_i32 = arith.constant 64 : i32
    %1 = vector.broadcast %c64_i32 : i32 to vector<8x128xi32>
    %2 = arith.cmpi sge, %0, %1 : vector<8x128xi32>
    %c96_i32 = arith.constant 96 : i32
    %3 = vector.broadcast %c96_i32 : i32 to vector<8x128xi32>
    %4 = arith.cmpi slt, %0, %3 : vector<8x128xi32>
    %5 = arith.andi %2, %4 : vector<8x128xi1>
    %c0 = arith.constant 0 : index
    %c0_0 = arith.constant 0 : index
    %c0_1 = arith.constant 0 : index
    %6 = vector.load %arg1[%c0, %c0_0, %c0_1] : memref<2x64x128xbf16, #tpu.memory_space<vmem>>, vector<1x64x128xbf16>
    %7 = vector.shape_cast %6 : vector<1x64x128xbf16> to vector<64x128xbf16>
    %c0_2 = arith.constant 0 : index
    %c0_3 = arith.constant 0 : index
    %c0_4 = arith.constant 0 : index
    %8 = vector.load %arg2[%c0_2, %c0_3, %c0_4] : memref<2x1x128xf32, #tpu.memory_space<vmem>>, vector<1x1x128xf32>
    %9 = vector.shape_cast %8 : vector<1x1x128xf32> to vector<1x128xf32>
    %c0_5 = arith.constant 0 : index
    %c0_6 = arith.constant 0 : index
    %10 = vector.load %arg3[%c0_5, %c0_6] : memref<8x32xf32, #tpu.memory_space<vmem>>, vector<8x32xf32>
    %cst = arith.constant 0.000000e+00 : f32
    %11 = vector.broadcast %cst : f32 to vector<8x32xf32>
    %c0_7 = arith.constant 0 : index
    %c0_8 = arith.constant 0 : index
    %c0_9 = arith.constant 0 : index
    %12 = vector.load %arg0[%c0_7, %c0_8, %c0_9] : memref<6x8x32xf32, #tpu.memory_space<vmem>>, vector<1x8x32xf32>
    %13 = vector.shape_cast %12 : vector<1x8x32xf32> to vector<8x32xf32>
    %14 = tpu.concatenate %13, %10 in 1 : vector<8x32xf32>, vector<8x32xf32> -> vector<8x64xf32>
    %15 = arith.truncf %14 : vector<8x64xf32> to vector<8x64xbf16>
    %cst_10 = arith.constant dense<0.000000e+00> : vector<8x128xf32>
    %16 = tpu.matmul %15, %7, %cst_10 {dimension_numbers = #tpu.dot_dimension_numbers<[1], [0], [0], [1], [0, 0, 1, 1], [], []>} : vector<8x64xbf16>, vector<64x128xbf16>, vector<8x128xf32> -> vector<8x128xf32>
    %17 = vector.broadcast %9 : vector<1x128xf32> to vector<8x128xf32>
    %18 = arith.addf %16, %17 : vector<8x128xf32>
    %19 = math.tanh %18 : vector<8x128xf32>
    %20 = arith.negf %18 : vector<8x128xf32>
    %21 = math.exp %20 : vector<8x128xf32>
    %cst_11 = arith.constant 1.000000e+00 : f32
    %22 = vector.broadcast %cst_11 : f32 to vector<8x128xf32>
    %23 = arith.addf %22, %21 : vector<8x128xf32>
    %24 = arith.divf %22, %23 : vector<8x128xf32>
    %25 = arith.select %5, %19, %24 : vector<8x128xi1>, vector<8x128xf32>
    %26 = vector.extract_strided_slice %25 {offsets = [0, 0], sizes = [8, 32], strides = [1, 1]} : vector<8x128xf32> to vector<8x32xf32>
    %27 = vector.extract_strided_slice %25 {offsets = [0, 32], sizes = [8, 32], strides = [1, 1]} : vector<8x128xf32> to vector<8x32xf32>
    %28 = vector.extract_strided_slice %25 {offsets = [0, 64], sizes = [8, 32], strides = [1, 1]} : vector<8x128xf32> to vector<8x32xf32>
    %29 = vector.extract_strided_slice %25 {offsets = [0, 96], sizes = [8, 32], strides = [1, 1]} : vector<8x128xf32> to vector<8x32xf32>
    %30 = arith.mulf %27, %11 : vector<8x32xf32>
    %31 = arith.mulf %26, %28 : vector<8x32xf32>
    %32 = arith.addf %30, %31 : vector<8x32xf32>
    %33 = math.tanh %32 : vector<8x32xf32>
    %34 = arith.mulf %29, %33 : vector<8x32xf32>
    %c0_12 = arith.constant 0 : index
    %c0_13 = arith.constant 0 : index
    %c0_14 = arith.constant 0 : index
    %35 = vector.load %arg5[%c0_12, %c0_13, %c0_14] : memref<6x8x32xf32, #tpu.memory_space<vmem>>, vector<1x8x32xf32>
    %36 = vector.shape_cast %35 : vector<1x8x32xf32> to vector<8x32xf32>
    %37 = vector.shape_cast %34 : vector<8x32xf32> to vector<1x8x32xf32>
    tpu.vector_store %arg5[%c0_12, %c0_13, %c0_14], %37 {strides = array<i32>} : memref<6x8x32xf32, #tpu.memory_space<vmem>>, vector<1x8x32xf32>,
    %c1 = arith.constant 1 : index
    %c0_15 = arith.constant 0 : index
    %c0_16 = arith.constant 0 : index
    %38 = vector.load %arg0[%c1, %c0_15, %c0_16] : memref<6x8x32xf32, #tpu.memory_space<vmem>>, vector<1x8x32xf32>
    %39 = vector.shape_cast %38 : vector<1x8x32xf32> to vector<8x32xf32>
    %40 = tpu.concatenate %39, %34 in 1 : vector<8x32xf32>, vector<8x32xf32> -> vector<8x64xf32>
    %41 = arith.truncf %40 : vector<8x64xf32> to vector<8x64xbf16>
    %cst_17 = arith.constant dense<0.000000e+00> : vector<8x128xf32>
    %42 = tpu.matmul %41, %7, %cst_17 {dimension_numbers = #tpu.dot_dimension_numbers<[1], [0], [0], [1], [0, 0, 1, 1], [], []>} : vector<8x64xbf16>, vector<64x128xbf16>, vector<8x128xf32> -> vector<8x128xf32>
    %43 = vector.broadcast %9 : vector<1x128xf32> to vector<8x128xf32>
    %44 = arith.addf %42, %43 : vector<8x128xf32>
    %45 = math.tanh %44 : vector<8x128xf32>
    %46 = arith.negf %44 : vector<8x128xf32>
    %47 = math.exp %46 : vector<8x128xf32>
    %cst_18 = arith.constant 1.000000e+00 : f32
    %48 = vector.broadcast %cst_18 : f32 to vector<8x128xf32>
    %49 = arith.addf %48, %47 : vector<8x128xf32>
    %50 = arith.divf %48, %49 : vector<8x128xf32>
    %51 = arith.select %5, %45, %50 : vector<8x128xi1>, vector<8x128xf32>
    %52 = vector.extract_strided_slice %51 {offsets = [0, 0], sizes = [8, 32], strides = [1, 1]} : vector<8x128xf32> to vector<8x32xf32>
    %53 = vector.extract_strided_slice %51 {offsets = [0, 32], sizes = [8, 32], strides = [1, 1]} : vector<8x128xf32> to vector<8x32xf32>
    %54 = vector.extract_strided_slice %51 {offsets = [0, 64], sizes = [8, 32], strides = [1, 1]} : vector<8x128xf32> to vector<8x32xf32>
    %55 = vector.extract_strided_slice %51 {offsets = [0, 96], sizes = [8, 32], strides = [1, 1]} : vector<8x128xf32> to vector<8x32xf32>
    %56 = arith.mulf %53, %32 : vector<8x32xf32>
    %57 = arith.mulf %52, %54 : vector<8x32xf32>
    %58 = arith.addf %56, %57 : vector<8x32xf32>
    %59 = math.tanh %58 : vector<8x32xf32>
    %60 = arith.mulf %55, %59 : vector<8x32xf32>
    %c1_19 = arith.constant 1 : index
    %c0_20 = arith.constant 0 : index
    %c0_21 = arith.constant 0 : index
    %61 = vector.load %arg5[%c1_19, %c0_20, %c0_21] : memref<6x8x32xf32, #tpu.memory_space<vmem>>, vector<1x8x32xf32>
    %62 = vector.shape_cast %61 : vector<1x8x32xf32> to vector<8x32xf32>
    %63 = vector.shape_cast %60 : vector<8x32xf32> to vector<1x8x32xf32>
    tpu.vector_store %arg5[%c1_19, %c0_20, %c0_21], %63 {strides = array<i32>} : memref<6x8x32xf32, #tpu.memory_space<vmem>>, vector<1x8x32xf32>,
    %c2 = arith.constant 2 : index
    %c0_22 = arith.constant 0 : index
    %c0_23 = arith.constant 0 : index
    %64 = vector.load %arg0[%c2, %c0_22, %c0_23] : memref<6x8x32xf32, #tpu.memory_space<vmem>>, vector<1x8x32xf32>
    %65 = vector.shape_cast %64 : vector<1x8x32xf32> to vector<8x32xf32>
    %66 = tpu.concatenate %65, %60 in 1 : vector<8x32xf32>, vector<8x32xf32> -> vector<8x64xf32>
    %67 = arith.truncf %66 : vector<8x64xf32> to vector<8x64xbf16>
    %cst_24 = arith.constant dense<0.000000e+00> : vector<8x128xf32>
    %68 = tpu.matmul %67, %7, %cst_24 {dimension_numbers = #tpu.dot_dimension_numbers<[1], [0], [0], [1], [0, 0, 1, 1], [], []>} : vector<8x64xbf16>, vector<64x128xbf16>, vector<8x128xf32> -> vector<8x128xf32>
    %69 = vector.broadcast %9 : vector<1x128xf32> to vector<8x128xf32>
    %70 = arith.addf %68, %69 : vector<8x128xf32>
    %71 = math.tanh %70 : vector<8x128xf32>
    %72 = arith.negf %70 : vector<8x128xf32>
    %73 = math.exp %72 : vector<8x128xf32>
    %cst_25 = arith.constant 1.000000e+00 : f32
    %74 = vector.broadcast %cst_25 : f32 to vector<8x128xf32>
    %75 = arith.addf %74, %73 : vector<8x128xf32>
    %76 = arith.divf %74, %75 : vector<8x128xf32>
    %77 = arith.select %5, %71, %76 : vector<8x128xi1>, vector<8x128xf32>
    %78 = vector.extract_strided_slice %77 {offsets = [0, 0], sizes = [8, 32], strides = [1, 1]} : vector<8x128xf32> to vector<8x32xf32>
    %79 = vector.extract_strided_slice %77 {offsets = [0, 32], sizes = [8, 32], strides = [1, 1]} : vector<8x128xf32> to vector<8x32xf32>
    %80 = vector.extract_strided_slice %77 {offsets = [0, 64], sizes = [8, 32], strides = [1, 1]} : vector<8x128xf32> to vector<8x32xf32>
    %81 = vector.extract_strided_slice %77 {offsets = [0, 96], sizes = [8, 32], strides = [1, 1]} : vector<8x128xf32> to vector<8x32xf32>
    %82 = arith.mulf %79, %58 : vector<8x32xf32>
    %83 = arith.mulf %78, %80 : vector<8x32xf32>
    %84 = arith.addf %82, %83 : vector<8x32xf32>
    %85 = math.tanh %84 : vector<8x32xf32>
    %86 = arith.mulf %81, %85 : vector<8x32xf32>
    %c2_26 = arith.constant 2 : index
    %c0_27 = arith.constant 0 : index
    %c0_28 = arith.constant 0 : index
    %87 = vector.load %arg5[%c2_26, %c0_27, %c0_28] : memref<6x8x32xf32, #tpu.memory_space<vmem>>, vector<1x8x32xf32>
    %88 = vector.shape_cast %87 : vector<1x8x32xf32> to vector<8x32xf32>
    %89 = vector.shape_cast %86 : vector<8x32xf32> to vector<1x8x32xf32>
    tpu.vector_store %arg5[%c2_26, %c0_27, %c0_28], %89 {strides = array<i32>} : memref<6x8x32xf32, #tpu.memory_space<vmem>>, vector<1x8x32xf32>,
    %c3 = arith.constant 3 : index
    %c0_29 = arith.constant 0 : index
    %c0_30 = arith.constant 0 : index
    %90 = vector.load %arg0[%c3, %c0_29, %c0_30] : memref<6x8x32xf32, #tpu.memory_space<vmem>>, vector<1x8x32xf32>
    %91 = vector.shape_cast %90 : vector<1x8x32xf32> to vector<8x32xf32>
    %92 = tpu.concatenate %91, %86 in 1 : vector<8x32xf32>, vector<8x32xf32> -> vector<8x64xf32>
    %93 = arith.truncf %92 : vector<8x64xf32> to vector<8x64xbf16>
    %cst_31 = arith.constant dense<0.000000e+00> : vector<8x128xf32>
    %94 = tpu.matmul %93, %7, %cst_31 {dimension_numbers = #tpu.dot_dimension_numbers<[1], [0], [0], [1], [0, 0, 1, 1], [], []>} : vector<8x64xbf16>, vector<64x128xbf16>, vector<8x128xf32> -> vector<8x128xf32>
    %95 = vector.broadcast %9 : vector<1x128xf32> to vector<8x128xf32>
    %96 = arith.addf %94, %95 : vector<8x128xf32>
    %97 = math.tanh %96 : vector<8x128xf32>
    %98 = arith.negf %96 : vector<8x128xf32>
    %99 = math.exp %98 : vector<8x128xf32>
    %cst_32 = arith.constant 1.000000e+00 : f32
    %100 = vector.broadcast %cst_32 : f32 to vector<8x128xf32>
    %101 = arith.addf %100, %99 : vector<8x128xf32>
    %102 = arith.divf %100, %101 : vector<8x128xf32>
    %103 = arith.select %5, %97, %102 : vector<8x128xi1>, vector<8x128xf32>
    %104 = vector.extract_strided_slice %103 {offsets = [0, 0], sizes = [8, 32], strides = [1, 1]} : vector<8x128xf32> to vector<8x32xf32>
    %105 = vector.extract_strided_slice %103 {offsets = [0, 32], sizes = [8, 32], strides = [1, 1]} : vector<8x128xf32> to vector<8x32xf32>
    %106 = vector.extract_strided_slice %103 {offsets = [0, 64], sizes = [8, 32], strides = [1, 1]} : vector<8x128xf32> to vector<8x32xf32>
    %107 = vector.extract_strided_slice %103 {offsets = [0, 96], sizes = [8, 32], strides = [1, 1]} : vector<8x128xf32> to vector<8x32xf32>
    %108 = arith.mulf %105, %84 : vector<8x32xf32>
    %109 = arith.mulf %104, %106 : vector<8x32xf32>
    %110 = arith.addf %108, %109 : vector<8x32xf32>
    %111 = math.tanh %110 : vector<8x32xf32>
    %112 = arith.mulf %107, %111 : vector<8x32xf32>
    %c3_33 = arith.constant 3 : index
    %c0_34 = arith.constant 0 : index
    %c0_35 = arith.constant 0 : index
    %113 = vector.load %arg5[%c3_33, %c0_34, %c0_35] : memref<6x8x32xf32, #tpu.memory_space<vmem>>, vector<1x8x32xf32>
    %114 = vector.shape_cast %113 : vector<1x8x32xf32> to vector<8x32xf32>
    %115 = vector.shape_cast %112 : vector<8x32xf32> to vector<1x8x32xf32>
    tpu.vector_store %arg5[%c3_33, %c0_34, %c0_35], %115 {strides = array<i32>} : memref<6x8x32xf32, #tpu.memory_space<vmem>>, vector<1x8x32xf32>,
    %c4 = arith.constant 4 : index
    %c0_36 = arith.constant 0 : index
    %c0_37 = arith.constant 0 : index
    %116 = vector.load %arg0[%c4, %c0_36, %c0_37] : memref<6x8x32xf32, #tpu.memory_space<vmem>>, vector<1x8x32xf32>
    %117 = vector.shape_cast %116 : vector<1x8x32xf32> to vector<8x32xf32>
    %118 = tpu.concatenate %117, %112 in 1 : vector<8x32xf32>, vector<8x32xf32> -> vector<8x64xf32>
    %119 = arith.truncf %118 : vector<8x64xf32> to vector<8x64xbf16>
    %cst_38 = arith.constant dense<0.000000e+00> : vector<8x128xf32>
    %120 = tpu.matmul %119, %7, %cst_38 {dimension_numbers = #tpu.dot_dimension_numbers<[1], [0], [0], [1], [0, 0, 1, 1], [], []>} : vector<8x64xbf16>, vector<64x128xbf16>, vector<8x128xf32> -> vector<8x128xf32>
    %121 = vector.broadcast %9 : vector<1x128xf32> to vector<8x128xf32>
    %122 = arith.addf %120, %121 : vector<8x128xf32>
    %123 = math.tanh %122 : vector<8x128xf32>
    %124 = arith.negf %122 : vector<8x128xf32>
    %125 = math.exp %124 : vector<8x128xf32>
    %cst_39 = arith.constant 1.000000e+00 : f32
    %126 = vector.broadcast %cst_39 : f32 to vector<8x128xf32>
    %127 = arith.addf %126, %125 : vector<8x128xf32>
    %128 = arith.divf %126, %127 : vector<8x128xf32>
    %129 = arith.select %5, %123, %128 : vector<8x128xi1>, vector<8x128xf32>
    %130 = vector.extract_strided_slice %129 {offsets = [0, 0], sizes = [8, 32], strides = [1, 1]} : vector<8x128xf32> to vector<8x32xf32>
    %131 = vector.extract_strided_slice %129 {offsets = [0, 32], sizes = [8, 32], strides = [1, 1]} : vector<8x128xf32> to vector<8x32xf32>
    %132 = vector.extract_strided_slice %129 {offsets = [0, 64], sizes = [8, 32], strides = [1, 1]} : vector<8x128xf32> to vector<8x32xf32>
    %133 = vector.extract_strided_slice %129 {offsets = [0, 96], sizes = [8, 32], strides = [1, 1]} : vector<8x128xf32> to vector<8x32xf32>
    %134 = arith.mulf %131, %110 : vector<8x32xf32>
    %135 = arith.mulf %130, %132 : vector<8x32xf32>
    %136 = arith.addf %134, %135 : vector<8x32xf32>
    %137 = math.tanh %136 : vector<8x32xf32>
    %138 = arith.mulf %133, %137 : vector<8x32xf32>
    %c4_40 = arith.constant 4 : index
    %c0_41 = arith.constant 0 : index
    %c0_42 = arith.constant 0 : index
    %139 = vector.load %arg5[%c4_40, %c0_41, %c0_42] : memref<6x8x32xf32, #tpu.memory_space<vmem>>, vector<1x8x32xf32>
    %140 = vector.shape_cast %139 : vector<1x8x32xf32> to vector<8x32xf32>
    %141 = vector.shape_cast %138 : vector<8x32xf32> to vector<1x8x32xf32>
    tpu.vector_store %arg5[%c4_40, %c0_41, %c0_42], %141 {strides = array<i32>} : memref<6x8x32xf32, #tpu.memory_space<vmem>>, vector<1x8x32xf32>,
    %c5 = arith.constant 5 : index
    %c0_43 = arith.constant 0 : index
    %c0_44 = arith.constant 0 : index
    %142 = vector.load %arg0[%c5, %c0_43, %c0_44] : memref<6x8x32xf32, #tpu.memory_space<vmem>>, vector<1x8x32xf32>
    %143 = vector.shape_cast %142 : vector<1x8x32xf32> to vector<8x32xf32>
    %144 = tpu.concatenate %143, %138 in 1 : vector<8x32xf32>, vector<8x32xf32> -> vector<8x64xf32>
    %145 = arith.truncf %144 : vector<8x64xf32> to vector<8x64xbf16>
    %cst_45 = arith.constant dense<0.000000e+00> : vector<8x128xf32>
    %146 = tpu.matmul %145, %7, %cst_45 {dimension_numbers = #tpu.dot_dimension_numbers<[1], [0], [0], [1], [0, 0, 1, 1], [], []>} : vector<8x64xbf16>, vector<64x128xbf16>, vector<8x128xf32> -> vector<8x128xf32>
    %147 = vector.broadcast %9 : vector<1x128xf32> to vector<8x128xf32>
    %148 = arith.addf %146, %147 : vector<8x128xf32>
    %149 = math.tanh %148 : vector<8x128xf32>
    %150 = arith.negf %148 : vector<8x128xf32>
    %151 = math.exp %150 : vector<8x128xf32>
    %cst_46 = arith.constant 1.000000e+00 : f32
    %152 = vector.broadcast %cst_46 : f32 to vector<8x128xf32>
    %153 = arith.addf %152, %151 : vector<8x128xf32>
    %154 = arith.divf %152, %153 : vector<8x128xf32>
    %155 = arith.select %5, %149, %154 : vector<8x128xi1>, vector<8x128xf32>
    %156 = vector.extract_strided_slice %155 {offsets = [0, 0], sizes = [8, 32], strides = [1, 1]} : vector<8x128xf32> to vector<8x32xf32>
    %157 = vector.extract_strided_slice %155 {offsets = [0, 32], sizes = [8, 32], strides = [1, 1]} : vector<8x128xf32> to vector<8x32xf32>
    %158 = vector.extract_strided_slice %155 {offsets = [0, 64], sizes = [8, 32], strides = [1, 1]} : vector<8x128xf32> to vector<8x32xf32>
    %159 = vector.extract_strided_slice %155 {offsets = [0, 96], sizes = [8, 32], strides = [1, 1]} : vector<8x128xf32> to vector<8x32xf32>
    %160 = arith.mulf %157, %136 : vector<8x32xf32>
    %161 = arith.mulf %156, %158 : vector<8x32xf32>
    %162 = arith.addf %160, %161 : vector<8x32xf32>
    %163 = math.tanh %162 : vector<8x32xf32>
    %164 = arith.mulf %159, %163 : vector<8x32xf32>
    %c5_47 = arith.constant 5 : index
    %c0_48 = arith.constant 0 : index
    %c0_49 = arith.constant 0 : index
    %165 = vector.load %arg5[%c5_47, %c0_48, %c0_49] : memref<6x8x32xf32, #tpu.memory_space<vmem>>, vector<1x8x32xf32>
    %166 = vector.shape_cast %165 : vector<1x8x32xf32> to vector<8x32xf32>
    %167 = vector.shape_cast %164 : vector<8x32xf32> to vector<1x8x32xf32>
    tpu.vector_store %arg5[%c5_47, %c0_48, %c0_49], %167 {strides = array<i32>} : memref<6x8x32xf32, #tpu.memory_space<vmem>>, vector<1x8x32xf32>,
    %c1_50 = arith.constant 1 : index
    %c0_51 = arith.constant 0 : index
    %c0_52 = arith.constant 0 : index
    %168 = vector.load %arg1[%c1_50, %c0_51, %c0_52] : memref<2x64x128xbf16, #tpu.memory_space<vmem>>, vector<1x64x128xbf16>
    %169 = vector.shape_cast %168 : vector<1x64x128xbf16> to vector<64x128xbf16>
    %c1_53 = arith.constant 1 : index
    %c0_54 = arith.constant 0 : index
    %c0_55 = arith.constant 0 : index
    %170 = vector.load %arg2[%c1_53, %c0_54, %c0_55] : memref<2x1x128xf32, #tpu.memory_space<vmem>>, vector<1x1x128xf32>
    %171 = vector.shape_cast %170 : vector<1x1x128xf32> to vector<1x128xf32>
    %c0_56 = arith.constant 0 : index
    %c0_57 = arith.constant 0 : index
    %172 = vector.load %arg3[%c0_56, %c0_57] : memref<8x32xf32, #tpu.memory_space<vmem>>, vector<8x32xf32>
    %cst_58 = arith.constant 0.000000e+00 : f32
    %173 = vector.broadcast %cst_58 : f32 to vector<8x32xf32>
    %c0_59 = arith.constant 0 : index
    %c0_60 = arith.constant 0 : index
    %c0_61 = arith.constant 0 : index
    %174 = vector.load %arg5[%c0_59, %c0_60, %c0_61] : memref<6x8x32xf32, #tpu.memory_space<vmem>>, vector<1x8x32xf32>
    %175 = vector.shape_cast %174 : vector<1x8x32xf32> to vector<8x32xf32>
    %176 = tpu.concatenate %175, %172 in 1 : vector<8x32xf32>, vector<8x32xf32> -> vector<8x64xf32>
    %177 = arith.truncf %176 : vector<8x64xf32> to vector<8x64xbf16>
    %cst_62 = arith.constant dense<0.000000e+00> : vector<8x128xf32>
    %178 = tpu.matmul %177, %169, %cst_62 {dimension_numbers = #tpu.dot_dimension_numbers<[1], [0], [0], [1], [0, 0, 1, 1], [], []>} : vector<8x64xbf16>, vector<64x128xbf16>, vector<8x128xf32> -> vector<8x128xf32>
    %179 = vector.broadcast %171 : vector<1x128xf32> to vector<8x128xf32>
    %180 = arith.addf %178, %179 : vector<8x128xf32>
    %181 = math.tanh %180 : vector<8x128xf32>
    %182 = arith.negf %180 : vector<8x128xf32>
    %183 = math.exp %182 : vector<8x128xf32>
    %cst_63 = arith.constant 1.000000e+00 : f32
    %184 = vector.broadcast %cst_63 : f32 to vector<8x128xf32>
    %185 = arith.addf %184, %183 : vector<8x128xf32>
    %186 = arith.divf %184, %185 : vector<8x128xf32>
    %187 = arith.select %5, %181, %186 : vector<8x128xi1>, vector<8x128xf32>
    %188 = vector.extract_strided_slice %187 {offsets = [0, 0], sizes = [8, 32], strides = [1, 1]} : vector<8x128xf32> to vector<8x32xf32>
    %189 = vector.extract_strided_slice %187 {offsets = [0, 32], sizes = [8, 32], strides = [1, 1]} : vector<8x128xf32> to vector<8x32xf32>
    %190 = vector.extract_strided_slice %187 {offsets = [0, 64], sizes = [8, 32], strides = [1, 1]} : vector<8x128xf32> to vector<8x32xf32>
    %191 = vector.extract_strided_slice %187 {offsets = [0, 96], sizes = [8, 32], strides = [1, 1]} : vector<8x128xf32> to vector<8x32xf32>
    %192 = arith.mulf %189, %173 : vector<8x32xf32>
    %193 = arith.mulf %188, %190 : vector<8x32xf32>
    %194 = arith.addf %192, %193 : vector<8x32xf32>
    %195 = math.tanh %194 : vector<8x32xf32>
    %196 = arith.mulf %191, %195 : vector<8x32xf32>
    %c0_64 = arith.constant 0 : index
    %c0_65 = arith.constant 0 : index
    %c0_66 = arith.constant 0 : index
    %197 = vector.load %arg4[%c0_64, %c0_65, %c0_66] : memref<6x8x32xf32, #tpu.memory_space<vmem>>, vector<1x8x32xf32>
    %198 = vector.shape_cast %197 : vector<1x8x32xf32> to vector<8x32xf32>
    %199 = vector.shape_cast %196 : vector<8x32xf32> to vector<1x8x32xf32>
    tpu.vector_store %arg4[%c0_64, %c0_65, %c0_66], %199 {strides = array<i32>} : memref<6x8x32xf32, #tpu.memory_space<vmem>>, vector<1x8x32xf32>,
    %c1_67 = arith.constant 1 : index
    %c0_68 = arith.constant 0 : index
    %c0_69 = arith.constant 0 : index
    %200 = vector.load %arg5[%c1_67, %c0_68, %c0_69] : memref<6x8x32xf32, #tpu.memory_space<vmem>>, vector<1x8x32xf32>
    %201 = vector.shape_cast %200 : vector<1x8x32xf32> to vector<8x32xf32>
    %202 = tpu.concatenate %201, %196 in 1 : vector<8x32xf32>, vector<8x32xf32> -> vector<8x64xf32>
    %203 = arith.truncf %202 : vector<8x64xf32> to vector<8x64xbf16>
    %cst_70 = arith.constant dense<0.000000e+00> : vector<8x128xf32>
    %204 = tpu.matmul %203, %169, %cst_70 {dimension_numbers = #tpu.dot_dimension_numbers<[1], [0], [0], [1], [0, 0, 1, 1], [], []>} : vector<8x64xbf16>, vector<64x128xbf16>, vector<8x128xf32> -> vector<8x128xf32>
    %205 = vector.broadcast %171 : vector<1x128xf32> to vector<8x128xf32>
    %206 = arith.addf %204, %205 : vector<8x128xf32>
    %207 = math.tanh %206 : vector<8x128xf32>
    %208 = arith.negf %206 : vector<8x128xf32>
    %209 = math.exp %208 : vector<8x128xf32>
    %cst_71 = arith.constant 1.000000e+00 : f32
    %210 = vector.broadcast %cst_71 : f32 to vector<8x128xf32>
    %211 = arith.addf %210, %209 : vector<8x128xf32>
    %212 = arith.divf %210, %211 : vector<8x128xf32>
    %213 = arith.select %5, %207, %212 : vector<8x128xi1>, vector<8x128xf32>
    %214 = vector.extract_strided_slice %213 {offsets = [0, 0], sizes = [8, 32], strides = [1, 1]} : vector<8x128xf32> to vector<8x32xf32>
    %215 = vector.extract_strided_slice %213 {offsets = [0, 32], sizes = [8, 32], strides = [1, 1]} : vector<8x128xf32> to vector<8x32xf32>
    %216 = vector.extract_strided_slice %213 {offsets = [0, 64], sizes = [8, 32], strides = [1, 1]} : vector<8x128xf32> to vector<8x32xf32>
    %217 = vector.extract_strided_slice %213 {offsets = [0, 96], sizes = [8, 32], strides = [1, 1]} : vector<8x128xf32> to vector<8x32xf32>
    %218 = arith.mulf %215, %194 : vector<8x32xf32>
    %219 = arith.mulf %214, %216 : vector<8x32xf32>
    %220 = arith.addf %218, %219 : vector<8x32xf32>
    %221 = math.tanh %220 : vector<8x32xf32>
    %222 = arith.mulf %217, %221 : vector<8x32xf32>
    %c1_72 = arith.constant 1 : index
    %c0_73 = arith.constant 0 : index
    %c0_74 = arith.constant 0 : index
    %223 = vector.load %arg4[%c1_72, %c0_73, %c0_74] : memref<6x8x32xf32, #tpu.memory_space<vmem>>, vector<1x8x32xf32>
    %224 = vector.shape_cast %223 : vector<1x8x32xf32> to vector<8x32xf32>
    %225 = vector.shape_cast %222 : vector<8x32xf32> to vector<1x8x32xf32>
    tpu.vector_store %arg4[%c1_72, %c0_73, %c0_74], %225 {strides = array<i32>} : memref<6x8x32xf32, #tpu.memory_space<vmem>>, vector<1x8x32xf32>,
    %c2_75 = arith.constant 2 : index
    %c0_76 = arith.constant 0 : index
    %c0_77 = arith.constant 0 : index
    %226 = vector.load %arg5[%c2_75, %c0_76, %c0_77] : memref<6x8x32xf32, #tpu.memory_space<vmem>>, vector<1x8x32xf32>
    %227 = vector.shape_cast %226 : vector<1x8x32xf32> to vector<8x32xf32>
    %228 = tpu.concatenate %227, %222 in 1 : vector<8x32xf32>, vector<8x32xf32> -> vector<8x64xf32>
    %229 = arith.truncf %228 : vector<8x64xf32> to vector<8x64xbf16>
    %cst_78 = arith.constant dense<0.000000e+00> : vector<8x128xf32>
    %230 = tpu.matmul %229, %169, %cst_78 {dimension_numbers = #tpu.dot_dimension_numbers<[1], [0], [0], [1], [0, 0, 1, 1], [], []>} : vector<8x64xbf16>, vector<64x128xbf16>, vector<8x128xf32> -> vector<8x128xf32>
    %231 = vector.broadcast %171 : vector<1x128xf32> to vector<8x128xf32>
    %232 = arith.addf %230, %231 : vector<8x128xf32>
    %233 = math.tanh %232 : vector<8x128xf32>
    %234 = arith.negf %232 : vector<8x128xf32>
    %235 = math.exp %234 : vector<8x128xf32>
    %cst_79 = arith.constant 1.000000e+00 : f32
    %236 = vector.broadcast %cst_79 : f32 to vector<8x128xf32>
    %237 = arith.addf %236, %235 : vector<8x128xf32>
    %238 = arith.divf %236, %237 : vector<8x128xf32>
    %239 = arith.select %5, %233, %238 : vector<8x128xi1>, vector<8x128xf32>
    %240 = vector.extract_strided_slice %239 {offsets = [0, 0], sizes = [8, 32], strides = [1, 1]} : vector<8x128xf32> to vector<8x32xf32>
    %241 = vector.extract_strided_slice %239 {offsets = [0, 32], sizes = [8, 32], strides = [1, 1]} : vector<8x128xf32> to vector<8x32xf32>
    %242 = vector.extract_strided_slice %239 {offsets = [0, 64], sizes = [8, 32], strides = [1, 1]} : vector<8x128xf32> to vector<8x32xf32>
    %243 = vector.extract_strided_slice %239 {offsets = [0, 96], sizes = [8, 32], strides = [1, 1]} : vector<8x128xf32> to vector<8x32xf32>
    %244 = arith.mulf %241, %220 : vector<8x32xf32>
    %245 = arith.mulf %240, %242 : vector<8x32xf32>
    %246 = arith.addf %244, %245 : vector<8x32xf32>
    %247 = math.tanh %246 : vector<8x32xf32>
    %248 = arith.mulf %243, %247 : vector<8x32xf32>
    %c2_80 = arith.constant 2 : index
    %c0_81 = arith.constant 0 : index
    %c0_82 = arith.constant 0 : index
    %249 = vector.load %arg4[%c2_80, %c0_81, %c0_82] : memref<6x8x32xf32, #tpu.memory_space<vmem>>, vector<1x8x32xf32>
    %250 = vector.shape_cast %249 : vector<1x8x32xf32> to vector<8x32xf32>
    %251 = vector.shape_cast %248 : vector<8x32xf32> to vector<1x8x32xf32>
    tpu.vector_store %arg4[%c2_80, %c0_81, %c0_82], %251 {strides = array<i32>} : memref<6x8x32xf32, #tpu.memory_space<vmem>>, vector<1x8x32xf32>,
    %c3_83 = arith.constant 3 : index
    %c0_84 = arith.constant 0 : index
    %c0_85 = arith.constant 0 : index
    %252 = vector.load %arg5[%c3_83, %c0_84, %c0_85] : memref<6x8x32xf32, #tpu.memory_space<vmem>>, vector<1x8x32xf32>
    %253 = vector.shape_cast %252 : vector<1x8x32xf32> to vector<8x32xf32>
    %254 = tpu.concatenate %253, %248 in 1 : vector<8x32xf32>, vector<8x32xf32> -> vector<8x64xf32>
    %255 = arith.truncf %254 : vector<8x64xf32> to vector<8x64xbf16>
    %cst_86 = arith.constant dense<0.000000e+00> : vector<8x128xf32>
    %256 = tpu.matmul %255, %169, %cst_86 {dimension_numbers = #tpu.dot_dimension_numbers<[1], [0], [0], [1], [0, 0, 1, 1], [], []>} : vector<8x64xbf16>, vector<64x128xbf16>, vector<8x128xf32> -> vector<8x128xf32>
    %257 = vector.broadcast %171 : vector<1x128xf32> to vector<8x128xf32>
    %258 = arith.addf %256, %257 : vector<8x128xf32>
    %259 = math.tanh %258 : vector<8x128xf32>
    %260 = arith.negf %258 : vector<8x128xf32>
    %261 = math.exp %260 : vector<8x128xf32>
    %cst_87 = arith.constant 1.000000e+00 : f32
    %262 = vector.broadcast %cst_87 : f32 to vector<8x128xf32>
    %263 = arith.addf %262, %261 : vector<8x128xf32>
    %264 = arith.divf %262, %263 : vector<8x128xf32>
    %265 = arith.select %5, %259, %264 : vector<8x128xi1>, vector<8x128xf32>
    %266 = vector.extract_strided_slice %265 {offsets = [0, 0], sizes = [8, 32], strides = [1, 1]} : vector<8x128xf32> to vector<8x32xf32>
    %267 = vector.extract_strided_slice %265 {offsets = [0, 32], sizes = [8, 32], strides = [1, 1]} : vector<8x128xf32> to vector<8x32xf32>
    %268 = vector.extract_strided_slice %265 {offsets = [0, 64], sizes = [8, 32], strides = [1, 1]} : vector<8x128xf32> to vector<8x32xf32>
    %269 = vector.extract_strided_slice %265 {offsets = [0, 96], sizes = [8, 32], strides = [1, 1]} : vector<8x128xf32> to vector<8x32xf32>
    %270 = arith.mulf %267, %246 : vector<8x32xf32>
    %271 = arith.mulf %266, %268 : vector<8x32xf32>
    %272 = arith.addf %270, %271 : vector<8x32xf32>
    %273 = math.tanh %272 : vector<8x32xf32>
    %274 = arith.mulf %269, %273 : vector<8x32xf32>
    %c3_88 = arith.constant 3 : index
    %c0_89 = arith.constant 0 : index
    %c0_90 = arith.constant 0 : index
    %275 = vector.load %arg4[%c3_88, %c0_89, %c0_90] : memref<6x8x32xf32, #tpu.memory_space<vmem>>, vector<1x8x32xf32>
    %276 = vector.shape_cast %275 : vector<1x8x32xf32> to vector<8x32xf32>
    %277 = vector.shape_cast %274 : vector<8x32xf32> to vector<1x8x32xf32>
    tpu.vector_store %arg4[%c3_88, %c0_89, %c0_90], %277 {strides = array<i32>} : memref<6x8x32xf32, #tpu.memory_space<vmem>>, vector<1x8x32xf32>,
    %c4_91 = arith.constant 4 : index
    %c0_92 = arith.constant 0 : index
    %c0_93 = arith.constant 0 : index
    %278 = vector.load %arg5[%c4_91, %c0_92, %c0_93] : memref<6x8x32xf32, #tpu.memory_space<vmem>>, vector<1x8x32xf32>
    %279 = vector.shape_cast %278 : vector<1x8x32xf32> to vector<8x32xf32>
    %280 = tpu.concatenate %279, %274 in 1 : vector<8x32xf32>, vector<8x32xf32> -> vector<8x64xf32>
    %281 = arith.truncf %280 : vector<8x64xf32> to vector<8x64xbf16>
    %cst_94 = arith.constant dense<0.000000e+00> : vector<8x128xf32>
    %282 = tpu.matmul %281, %169, %cst_94 {dimension_numbers = #tpu.dot_dimension_numbers<[1], [0], [0], [1], [0, 0, 1, 1], [], []>} : vector<8x64xbf16>, vector<64x128xbf16>, vector<8x128xf32> -> vector<8x128xf32>
    %283 = vector.broadcast %171 : vector<1x128xf32> to vector<8x128xf32>
    %284 = arith.addf %282, %283 : vector<8x128xf32>
    %285 = math.tanh %284 : vector<8x128xf32>
    %286 = arith.negf %284 : vector<8x128xf32>
    %287 = math.exp %286 : vector<8x128xf32>
    %cst_95 = arith.constant 1.000000e+00 : f32
    %288 = vector.broadcast %cst_95 : f32 to vector<8x128xf32>
    %289 = arith.addf %288, %287 : vector<8x128xf32>
    %290 = arith.divf %288, %289 : vector<8x128xf32>
    %291 = arith.select %5, %285, %290 : vector<8x128xi1>, vector<8x128xf32>
    %292 = vector.extract_strided_slice %291 {offsets = [0, 0], sizes = [8, 32], strides = [1, 1]} : vector<8x128xf32> to vector<8x32xf32>
    %293 = vector.extract_strided_slice %291 {offsets = [0, 32], sizes = [8, 32], strides = [1, 1]} : vector<8x128xf32> to vector<8x32xf32>
    %294 = vector.extract_strided_slice %291 {offsets = [0, 64], sizes = [8, 32], strides = [1, 1]} : vector<8x128xf32> to vector<8x32xf32>
    %295 = vector.extract_strided_slice %291 {offsets = [0, 96], sizes = [8, 32], strides = [1, 1]} : vector<8x128xf32> to vector<8x32xf32>
    %296 = arith.mulf %293, %272 : vector<8x32xf32>
    %297 = arith.mulf %292, %294 : vector<8x32xf32>
    %298 = arith.addf %296, %297 : vector<8x32xf32>
    %299 = math.tanh %298 : vector<8x32xf32>
    %300 = arith.mulf %295, %299 : vector<8x32xf32>
    %c4_96 = arith.constant 4 : index
    %c0_97 = arith.constant 0 : index
    %c0_98 = arith.constant 0 : index
    %301 = vector.load %arg4[%c4_96, %c0_97, %c0_98] : memref<6x8x32xf32, #tpu.memory_space<vmem>>, vector<1x8x32xf32>
    %302 = vector.shape_cast %301 : vector<1x8x32xf32> to vector<8x32xf32>
    %303 = vector.shape_cast %300 : vector<8x32xf32> to vector<1x8x32xf32>
    tpu.vector_store %arg4[%c4_96, %c0_97, %c0_98], %303 {strides = array<i32>} : memref<6x8x32xf32, #tpu.memory_space<vmem>>, vector<1x8x32xf32>,
    %c5_99 = arith.constant 5 : index
    %c0_100 = arith.constant 0 : index
    %c0_101 = arith.constant 0 : index
    %304 = vector.load %arg5[%c5_99, %c0_100, %c0_101] : memref<6x8x32xf32, #tpu.memory_space<vmem>>, vector<1x8x32xf32>
    %305 = vector.shape_cast %304 : vector<1x8x32xf32> to vector<8x32xf32>
    %306 = tpu.concatenate %305, %300 in 1 : vector<8x32xf32>, vector<8x32xf32> -> vector<8x64xf32>
    %307 = arith.truncf %306 : vector<8x64xf32> to vector<8x64xbf16>
    %cst_102 = arith.constant dense<0.000000e+00> : vector<8x128xf32>
    %308 = tpu.matmul %307, %169, %cst_102 {dimension_numbers = #tpu.dot_dimension_numbers<[1], [0], [0], [1], [0, 0, 1, 1], [], []>} : vector<8x64xbf16>, vector<64x128xbf16>, vector<8x128xf32> -> vector<8x128xf32>
    %309 = vector.broadcast %171 : vector<1x128xf32> to vector<8x128xf32>
    %310 = arith.addf %308, %309 : vector<8x128xf32>
    %311 = math.tanh %310 : vector<8x128xf32>
    %312 = arith.negf %310 : vector<8x128xf32>
    %313 = math.exp %312 : vector<8x128xf32>
    %cst_103 = arith.constant 1.000000e+00 : f32
    %314 = vector.broadcast %cst_103 : f32 to vector<8x128xf32>
    %315 = arith.addf %314, %313 : vector<8x128xf32>
    %316 = arith.divf %314, %315 : vector<8x128xf32>
    %317 = arith.select %5, %311, %316 : vector<8x128xi1>, vector<8x128xf32>
    %318 = vector.extract_strided_slice %317 {offsets = [0, 0], sizes = [8, 32], strides = [1, 1]} : vector<8x128xf32> to vector<8x32xf32>
    %319 = vector.extract_strided_slice %317 {offsets = [0, 32], sizes = [8, 32], strides = [1, 1]} : vector<8x128xf32> to vector<8x32xf32>
    %320 = vector.extract_strided_slice %317 {offsets = [0, 64], sizes = [8, 32], strides = [1, 1]} : vector<8x128xf32> to vector<8x32xf32>
    %321 = vector.extract_strided_slice %317 {offsets = [0, 96], sizes = [8, 32], strides = [1, 1]} : vector<8x128xf32> to vector<8x32xf32>
    %322 = arith.mulf %319, %298 : vector<8x32xf32>
    %323 = arith.mulf %318, %320 : vector<8x32xf32>
    %324 = arith.addf %322, %323 : vector<8x32xf32>
    %325 = math.tanh %324 : vector<8x32xf32>
    %326 = arith.mulf %321, %325 : vector<8x32xf32>
    %c5_104 = arith.constant 5 : index
    %c0_105 = arith.constant 0 : index
    %c0_106 = arith.constant 0 : index
    %327 = vector.load %arg4[%c5_104, %c0_105, %c0_106] : memref<6x8x32xf32, #tpu.memory_space<vmem>>, vector<1x8x32xf32>
    %328 = vector.shape_cast %327 : vector<1x8x32xf32> to vector<8x32xf32>
    %329 = vector.shape_cast %326 : vector<8x32xf32> to vector<1x8x32xf32>
    tpu.vector_store %arg4[%c5_104, %c0_105, %c0_106], %329 {strides = array<i32>} : memref<6x8x32xf32, #tpu.memory_space<vmem>>, vector<1x8x32xf32>,
    return
  }
}

</mosaic_0001>

<bundles_post_ra>
// kernel: tpu_custom_call.1
= control target key start
LH: loop header
LB: loop body
LE: loop exit
PB: predicated region body
PF: predicated region fallthrough
CT: control target
= control target key end

     0   :  { %9 = vsyncpa [#allocation4], 0  ;;  %s1579_s0 = inlined_call_operand.hbm [shape: f32[6,8,32], index: 0, kind: input, shape index: {}]   ;;  %s1580_s1 = inlined_call_operand.hbm [shape: bf16[2,64,128], index: 1, kind: input, shape index: {}]   ;;  %s1581_s2 = inlined_call_operand.hbm [shape: f32[2,1,128], index: 2, kind: input, shape index: {}]   ;;  %s1582_s3 = inlined_call_operand.hbm [shape: f32[8,32], index: 3, kind: input, shape index: {}]   ;;  %s1583_s4 = inlined_call_operand.hbm [shape: f32[6,8,32], index: 4, kind: output, shape index: {}]  }
   0x1   :  { %10 = vsyncpa [#allocation7], 0 }
   0x2   :  { %11 = vsyncpa [#allocation10], 0  ;;  %s30_s17 = sshll.u32 %s1580_s1, 4  ;;  %s31_s17 = int_to_ptr.hbm [resolvable:$true] %s30_s17 }
   0x3   :  { %12 = vsyncpa [#allocation5], 0  ;;  %s1283_s18 = smov [#allocation6]   ;;  %s17_s22 = sshll.u32 %s1579_s0, 4  ;;  %s18_s22 = int_to_ptr.hbm [resolvable:$true] %s17_s22 }
   0x4   :  { %s32_s19 = sshll.u32 %s1283_s18, 4  ;;  %s1284_s23 = smov 64   ;;  %s33_s19 = int_to_ptr.vmem [resolvable:$true] %s32_s19 }
   0x5   :  { %s1285_s24 = smov 4   ;;  %s1286_s25 = smov [#allocation3]  }
   0x6   :  { %38 = dma.hbm_to_vmem [thread:$0]  %s31_s17, 1024, %s33_s19, [#allocation7], %s1284_s23, %s1284_s23, %s1285_s24  }
   0x7   :  { %s19_s26 = sshll.u32 %s1286_s25, 4  ;;  %s1287_s27 = smov 128   ;;  %s20_s26 = int_to_ptr.vmem [resolvable:$true] %s19_s26 }
   0x8   :  { %s1288_s1 = smov 8   ;;  %s43_s30 = sshll.u32 %s1581_s2, 4  ;;  %s44_s30 = int_to_ptr.hbm [resolvable:$true] %s43_s30 }
   0x9   :  { %25 = dma.hbm_to_vmem [thread:$0]  %s18_s22, 768, %s20_s26, [#allocation4], %s1287_s27, %s1287_s27, %s1288_s1  }
   0xa   :  { %s1289_s0 = smov [#allocation8]   ;;  %s57_s8 = sshll.u32 %s1582_s3, 4  ;;  %s58_s8 = int_to_ptr.hbm [resolvable:$true] %s57_s8 }
   0xb   :  { %s45_s5 = sshll.u32 %s1289_s0, 4  ;;  %s1290_s9 = smov 16   ;;  %s46_s5 = int_to_ptr.vmem [resolvable:$true] %s45_s5 }
   0xc   :  { %s1291_s10 = smov 1   ;;  %s1292_s11 = smov [#allocation9]  }
   0xd   :  { %51 = dma.hbm_to_vmem [thread:$0]  %s44_s30, 32, %s46_s5, [#allocation7], %s1290_s9, %s1290_s9, %s1291_s10  }
   0xe   :  { %s59_s12 = sshll.u32 %s1292_s11, 4  ;;  %s60_s12 = int_to_ptr.vmem [resolvable:$true] %s59_s12 }
   0xf   :  { %62 = dma.hbm_to_vmem [thread:$0]  %s58_s8, 128, %s60_s12, [#allocation10]  }
  0x10   :  { %1275 = dma.done.wait [#allocation4], 768  }
  0x11   :  { %1276 = vsyncadd [#allocation4], 4294966528 }
  0x12   :  { %1277 = dma.done.wait [#allocation7], 1056  }
  0x13   :  { %1278 = vsyncadd [#allocation7], 4294966240 }
  0x14   :  { %1279 = dma.done.wait [#allocation10], 128  }
  0x15   :  { %1280 = vsyncadd [#allocation10], 4294967168  ;;  %v1337_v0 = vld [vmem:[#allocation9] sm:$0xff]  ;;  %v1040_v1 = vld [vmem:[#allocation6 + $0x18] sm:$0xff]  ;;  %s1293_s2 = smov 32   ;;  %vm100_vm0 = vcmask 261120   ;;  %v80_v16 = vlaneseq }
  0x16   :  { %97 = vrot.lane.b32.xlu0 %v1337_v0, %s1293_s2  ;;  %138 = vmatpush.bf16.msra.mxu0 %v1040_v1  ;;  %v1039_v2 = vld [vmem:[#allocation6 + $0x10] sm:$0xff]  ;;  %v1038_v3 = vld [vmem:[#allocation6 + $0x8] sm:$0xff]  ;;  %v1037_v4 = vld [vmem:[#allocation6] sm:$0xff]  ;;  %vm130_vm1 = vcmask 523264   ;;  %s1294_s3 = smov [#allocation11]   ;;  %s966_s16 = sshll.u32 %s1583_s4, 4  ;;  %s967_s16 = int_to_ptr.hbm [resolvable:$true] %s966_s16 }
  0x17   :  { %204 = vmatpush.bf16.msra.mxu1 %v1040_v1  ;;  %271 = vmatpush.bf16.msra.mxu2 %v1040_v1  ;;  %v95_v5 = vld [vmem:[#allocation3] sm:$0xff]  ;;  %v1343_v9 = vld [vmem:[#allocation8] ss:$0 sm:$0xff]  ;;  %v81_v18 = vand.u32 127, %v80_v16  ;;  %v191_v39 = vld [vmem:[#allocation3 + $0x8] sm:$0xff]  ;;  %s964_s13 = sshll.u32 %s1294_s3, 4  ;;  %s965_s13 = int_to_ptr.vmem [resolvable:$true] %s964_s13 }
  0x18   :  { %338 = vmatpush.bf16.msra.mxu3 %v1040_v1 }
  0x19   :  { %vm82_vm2 = vcmp.ge.s32.totalorder %v81_v18, 64  ;;  %vm83_vm3 = vcmp.lt.s32.totalorder %v81_v18, 96 }
  0x1a   :  { %139 = vmatpush.bf16.msra.mxu0 %v1039_v2  ;;  %vm1346_vm5 = vmand %vm82_vm2, %vm83_vm3 }
  0x1b   :  { %205 = vmatpush.bf16.msra.mxu1 %v1039_v2  ;;  %272 = vmatpush.bf16.msra.mxu2 %v1039_v2 }
  0x1c   :  { %339 = vmatpush.bf16.msra.mxu3 %v1039_v2 }
  0x1e   :  { %140 = vmatpush.bf16.msra.mxu0 %v1038_v3 }
  0x1f   :  { %206 = vmatpush.bf16.msra.mxu1 %v1038_v3  ;;  %273 = vmatpush.bf16.msra.mxu2 %v1038_v3 }
  0x20   :  { %340 = vmatpush.bf16.msra.mxu3 %v1038_v3 }
  0x22   :  { %141 = vmatpush.bf16.msra.mxu0 %v1037_v4 }
  0x23   :  { %207 = vmatpush.bf16.msra.mxu1 %v1037_v4  ;;  %274 = vmatpush.bf16.msra.mxu2 %v1037_v4 }
  0x24   :  { %341 = vmatpush.bf16.msra.mxu3 %v1037_v4 }
  0x26   :  { %405 = vmatpush.bf16.msrb.mxu0 %v1040_v1 }
  0x27   :  { %472 = vmatpush.bf16.msrb.mxu1 %v1040_v1 }
  0x2a   :  { %406 = vmatpush.bf16.msrb.mxu0 %v1039_v2 }
  0x2b   :  { %473 = vmatpush.bf16.msrb.mxu1 %v1039_v2 }
  0x2e   :  { %407 = vmatpush.bf16.msrb.mxu0 %v1038_v3 }
  0x2f   :  { %474 = vmatpush.bf16.msrb.mxu1 %v1038_v3 }
  0x32   :  { %408 = vmatpush.bf16.msrb.mxu0 %v1037_v4 }
  0x33   :  { %475 = vmatpush.bf16.msrb.mxu1 %v1037_v4 }
  0x88   :  { %v98_v6 = vpop.permute.xlu0 %97 }
  0x89   :  { %v101_v7 = vsel %vm100_vm0, %v95_v5, %v98_v6 }
  0x8a   :  { %v102_v8 = vpack.c.bf16 %v101_v7, %v101_v7  ;;  %v1375_v7 = vld [vmem:[#allocation6 + $0x38] sm:$0xff] }
  0x8b   :  { %578 = vmatpush.bf16.msrb.mxu2 %v1375_v7  ;;  %643 = vmatpush.bf16.msrb.mxu3 %v1375_v7 }
  0x8c   :  { %997 = vmatmul.msk.bf16.vlgmr.msra.gmra.mxu0 %vm130_vm1, %v102_v8  ;;  %v1378_v8 = vld [vmem:[#allocation6 + $0x30] sm:$0xff] }
  0x8d   :  { %709 = vmatpush.bf16.msra.mxu0 %v1375_v7 }
  0x8f   :  { %579 = vmatpush.bf16.msrb.mxu2 %v1378_v8  ;;  %644 = vmatpush.bf16.msrb.mxu3 %v1378_v8 }
  0x91   :  { %710 = vmatpush.bf16.msra.mxu0 %v1378_v8 }
 0x109   :  { %v143_v10 = vpop.f32.mrf.mxu0 }
 0x10a   :  { %v144_v11 = vadd.f32 %v1343_v9, %v143_v10  ;;  %v1390_v10 = vld [vmem:[#allocation6 + $0x20] sm:$0xff] }
 0x10c   :  { %v998_v12 = vmul.f32 -1.442695, %v144_v11 }
 0x10e   :  { %1059 = vpow2.f32 %v998_v12 }
 0x111   :  { %v145_v13 = vpop.f32.mrf.mxu0 }
 0x114   :  { %v1060_v14 = vpop.eup %1059 }
 0x115   :  { %v151_v15 = vadd.f32 1.0, %v1060_v14 }
 0x117   :  { %1061 = vrcp.f32 %v151_v15  ;;  %v163_v21 = vand.u32 2147483648, %v151_v15  ;;  %v161_v23 = vand.u32 2147483647, %v151_v15  ;;  %vm157_vm6 = vweird.f32 %v151_v15 }
 0x118   :  { %1063 = vtanh.f32 %v144_v11  ;;  %v258_v11 = vld [vmem:[#allocation3 + $0x10] sm:$0xff] }
 0x119   :  { %v164_v26 = vor.u32 1.1754944e-38, %v163_v21  ;;  %vm162_vm8 = vcmp.eq.f32.partialorder %v161_v23, 8.507059e+37 }
 0x11d   :  { %v1062_v17 = vpop.eup %1061 }
 0x11e   :  { %v153_v19 = vmul.f32 %v1062_v17, %v151_v15  ;;  %vm158_vm4 = vweird.f32 %v1062_v17  ;;  %v1064_v28 = vpop.eup %1063 }
 0x11f   :  { %vm159_vm7 = vmor %vm157_vm6, %vm158_vm4 }
 0x120   :  { %v154_v20 = vsub.f32 1.0, %v153_v19 }
 0x122   :  { %v155_v22 = vmul.f32 %v1062_v17, %v154_v20 }
 0x124   :  { %v156_v25 = vadd.f32 %v1062_v17, %v155_v22 }
 0x126   :  { %v160_v27 = vsel %vm159_vm7, %v1062_v17, %v156_v25 }
 0x127   :  { %v165_v29 = vsel %vm162_vm8, %v164_v26, %v160_v27  ;;  %v1408_v26 = vld [vmem:[#allocation8 + $0x1] ss:$0 sm:$0xff] }
 0x128   :  { %v167_v30 = vsel %vm1346_vm5, %v1064_v28, %v165_v29 }
 0x129   :  { %170 = vrot.lane.b32.xlu0 %v167_v30, %s1284_s23  ;;  %v168_v33 = vmul.f32 0.0, %v167_v30 }
 0x19b   :  { %v171_v31 = vpop.permute.xlu0 %170 }
 0x19c   :  { %v173_v32 = vmul.f32 %v171_v31, %v167_v30 }
 0x19e   :  { %175 = vrot.lane.b32.xlu1 %v173_v32, %s1293_s2 }
 0x210   :  { %v176_v34 = vpop.permute.xlu1 %175 }
 0x211   :  { %v178_v35 = vadd.f32 %v176_v34, %v168_v33 }
 0x213   :  { %1065 = vtanh.f32 %v178_v35 }
 0x219   :  { %v1066_v36 = vpop.eup %1065 }
 0x21a   :  { %181 = vrot.lane.b32.xlu1 %v1066_v36, %s1284_s23 }
 0x28c   :  { %v182_v37 = vpop.permute.xlu1 %181 }
 0x28d   :  { %v184_v38 = vmul.f32 %v182_v37, %v167_v30 }
 0x28f   :  { %192 = vrot.lane.b32.xlu2 %v184_v38, %s1284_s23 }
 0x2e9   :  { %v193_v40 = vpop.permute.xlu2 %192 }
 0x2ea   :  { %v195_v41 = vsel %vm100_vm0, %v191_v39, %v193_v40 }
 0x2eb   :  { %v196_v42 = vpack.c.bf16 %v195_v41, %v195_v41 }
 0x2ed   :  { %999 = vmatmul.msk.bf16.vlgmr.msra.gmra.mxu1 %vm130_vm1, %v196_v42 }
 0x2ee   :  { %775 = vmatpush.bf16.msra.mxu1 %v1375_v7 }
 0x2f2   :  { %776 = vmatpush.bf16.msra.mxu1 %v1378_v8 }
 0x36a   :  { %v209_v43 = vpop.f32.mrf.mxu1 }
 0x36b   :  { %v210_v44 = vadd.f32 %v1343_v9, %v209_v43 }
 0x36d   :  { %v1000_v45 = vmul.f32 -1.442695, %v210_v44 }
 0x36f   :  { %1067 = vpow2.f32 %v1000_v45 }
 0x372   :  { %v211_v46 = vpop.f32.mrf.mxu1 }
 0x375   :  { %v1068_v47 = vpop.eup %1067 }
 0x376   :  { %v217_v48 = vadd.f32 1.0, %v1068_v47 }
 0x378   :  { %1069 = vrcp.f32 %v217_v48  ;;  %v229_v52 = vand.u32 2147483648, %v217_v48  ;;  %v227_v54 = vand.u32 2147483647, %v217_v48  ;;  %vm223_vm10 = vweird.f32 %v217_v48 }
 0x379   :  { %1071 = vtanh.f32 %v210_v44 }
 0x37a   :  { %v230_v56 = vor.u32 1.1754944e-38, %v229_v52  ;;  %vm228_vm12 = vcmp.eq.f32.partialorder %v227_v54, 8.507059e+37 }
 0x37e   :  { %v1070_v49 = vpop.eup %1069 }
 0x37f   :  { %v219_v50 = vmul.f32 %v1070_v49, %v217_v48  ;;  %vm224_vm9 = vweird.f32 %v1070_v49  ;;  %v1072_v58 = vpop.eup %1071 }
 0x380   :  { %vm225_vm11 = vmor %vm223_vm10, %vm224_vm9 }
 0x381   :  { %v220_v51 = vsub.f32 1.0, %v219_v50 }
 0x383   :  { %v221_v53 = vmul.f32 %v1070_v49, %v220_v51 }
 0x385   :  { %v222_v55 = vadd.f32 %v1070_v49, %v221_v53 }
 0x387   :  { %v226_v57 = vsel %vm225_vm11, %v1070_v49, %v222_v55 }
 0x388   :  { %v231_v59 = vsel %vm228_vm12, %v230_v56, %v226_v57 }
 0x389   :  { %v233_v60 = vsel %vm1346_vm5, %v1072_v58, %v231_v59 }
 0x38a   :  { %236 = vrot.lane.b32.xlu2 %v233_v60, %s1284_s23  ;;  %v234_v63 = vmul.f32 %v233_v60, %v178_v35 }
 0x3e4   :  { %v237_v61 = vpop.permute.xlu2 %236 }
 0x3e5   :  { %v239_v62 = vmul.f32 %v237_v61, %v233_v60 }
 0x3e7   :  { %241 = vrot.lane.b32.xlu0 %v239_v62, %s1293_s2 }
 0x3ef   :  { %186 = vrot.lane.b32.xlu0 %v184_v38, %s1293_s2 }
 0x459   :  { %v242_v1 = vpop.permute.xlu0 %241 }
 0x45a   :  { %v1364_v2 = vadd.f32 %v242_v1, %v234_v63 }
 0x45c   :  { %1073 = vtanh.f32 %v1364_v2 }
 0x461   :  { %v187_v3 = vpop.permute.xlu0 %186 }
 0x462   :  { %v1074_v4 = vpop.eup %1073  ;;  %189 = vst.msk [vmem:[#allocation2] sm:$0xff] %vm100_vm0, %v187_v3 }
 0x463   :  { %247 = vrot.lane.b32.xlu1 %v1074_v4, %s1284_s23 }
 0x469   :  { %v537_v16 = vld [vmem:[#allocation2] sm:$0xff] }
 0x46b   :  { %539 = vrot.lane.b32.xlu1 %v1337_v0, %s1293_s2  ;;  %v1384_v0 = vld [vmem:[#allocation6 + $0x28] sm:$0xff] }
 0x46c   :  { %580 = vmatpush.bf16.msrb.mxu2 %v1384_v0  ;;  %645 = vmatpush.bf16.msrb.mxu3 %v1384_v0 }
 0x46d   :  { %711 = vmatpush.bf16.msra.mxu0 %v1384_v0  ;;  %777 = vmatpush.bf16.msra.mxu1 %v1384_v0 }
 0x470   :  { %581 = vmatpush.bf16.msrb.mxu2 %v1390_v10  ;;  %646 = vmatpush.bf16.msrb.mxu3 %v1390_v10 }
 0x471   :  { %712 = vmatpush.bf16.msra.mxu0 %v1390_v10  ;;  %778 = vmatpush.bf16.msra.mxu1 %v1390_v10 }
 0x4d5   :  { %v248_v5 = vpop.permute.xlu1 %247 }
 0x4d6   :  { %v1371_v6 = vmul.f32 %v248_v5, %v233_v60 }
 0x4d8   :  { %259 = vrot.lane.b32.xlu2 %v1371_v6, %s1284_s23 }
 0x4dd   :  { %v540_v15 = vpop.permute.xlu1 %539 }
 0x4de   :  { %v542_v17 = vsel %vm100_vm0, %v537_v16, %v540_v15 }
 0x4df   :  { %v543_v18 = vpack.c.bf16 %v542_v17, %v542_v17 }
 0x532   :  { %v260_v12 = vpop.permute.xlu2 %259 }
 0x533   :  { %v262_v13 = vsel %vm100_vm0, %v258_v11, %v260_v12 }
 0x534   :  { %v263_v14 = vpack.c.bf16 %v262_v13, %v262_v13 }
 0x536   :  { %1001 = vmatmul.msk.bf16.vlgmr.msra.gmra.mxu2 %vm130_vm1, %v263_v14 }
 0x537   :  { %841 = vmatpush.bf16.msra.mxu2 %v1375_v7 }
 0x53b   :  { %842 = vmatpush.bf16.msra.mxu2 %v1378_v8 }
 0x53f   :  { %843 = vmatpush.bf16.msra.mxu2 %v1384_v0 }
 0x543   :  { %844 = vmatpush.bf16.msra.mxu2 %v1390_v10 }
 0x546   :  { %1025 = vmatmul.msk.bf16.vlgmr.msrb.gmra.mxu2 %vm130_vm1, %v543_v18 }
 0x5b9   :  { %v276_v19 = vpop.f32.mrf.mxu2 }
 0x5ba   :  { %v277_v20 = vadd.f32 %v1343_v9, %v276_v19 }
 0x5bc   :  { %v1002_v21 = vmul.f32 -1.442695, %v277_v20 }
 0x5be   :  { %1075 = vpow2.f32 %v1002_v21 }
 0x5c1   :  { %v278_v22 = vpop.f32.mrf.mxu2 }
 0x5c4   :  { %v1076_v23 = vpop.eup %1075 }
 0x5c5   :  { %v284_v25 = vadd.f32 1.0, %v1076_v23 }
 0x5c7   :  { %1077 = vrcp.f32 %v284_v25  ;;  %v296_v34 = vand.u32 2147483648, %v284_v25  ;;  %v294_v36 = vand.u32 2147483647, %v284_v25  ;;  %vm290_vm14 = vweird.f32 %v284_v25 }
 0x5c9   :  { %v583_v27 = vpop.f32.mrf.mxu2  ;;  %v297_v40 = vor.u32 1.1754944e-38, %v296_v34  ;;  %vm295_vm2 = vcmp.eq.f32.partialorder %v294_v36, 8.507059e+37 }
 0x5ca   :  { %v584_v28 = vadd.f32 %v1408_v26, %v583_v27 }
 0x5cc   :  { %v1026_v29 = vmul.f32 -1.442695, %v584_v28 }
 0x5cd   :  { %v1078_v30 = vpop.eup %1077 }
 0x5ce   :  { %1079 = vpow2.f32 %v1026_v29  ;;  %v286_v31 = vmul.f32 %v1078_v30, %v284_v25  ;;  %vm291_vm13 = vweird.f32 %v1078_v30 }
 0x5cf   :  { %1081 = vtanh.f32 %v277_v20  ;;  %vm292_vm15 = vmor %vm290_vm14, %vm291_vm13 }
 0x5d0   :  { %v287_v32 = vsub.f32 1.0, %v286_v31 }
 0x5d1   :  { %v585_v33 = vpop.f32.mrf.mxu2 }
 0x5d2   :  { %v288_v35 = vmul.f32 %v1078_v30, %v287_v32 }
 0x5d4   :  { %v1080_v37 = vpop.eup %1079  ;;  %v289_v38 = vadd.f32 %v1078_v30, %v288_v35 }
 0x5d5   :  { %v591_v39 = vadd.f32 1.0, %v1080_v37  ;;  %v1082_v42 = vpop.eup %1081 }
 0x5d6   :  { %v293_v41 = vsel %vm292_vm15, %v1078_v30, %v289_v38 }
 0x5d7   :  { %1083 = vrcp.f32 %v591_v39  ;;  %v298_v43 = vsel %vm295_vm2, %v297_v40, %v293_v41  ;;  %v603_v48 = vand.u32 2147483648, %v591_v39  ;;  %v601_v50 = vand.u32 2147483647, %v591_v39 }
 0x5d8   :  { %v300_v44 = vsel %vm1346_vm5, %v1082_v42, %v298_v43  ;;  %1085 = vtanh.f32 %v584_v28  ;;  %vm597_vm4 = vweird.f32 %v591_v39 }
 0x5d9   :  { %303 = vrot.lane.b32.xlu2 %v300_v44, %s1284_s23  ;;  %v604_v52 = vor.u32 1.1754944e-38, %v603_v48  ;;  %vm602_vm7 = vcmp.eq.f32.partialorder %v601_v50, 8.507059e+37  ;;  %v301_v61 = vmul.f32 %v300_v44, %v1364_v2 }
 0x5dd   :  { %v1084_v45 = vpop.eup %1083 }
 0x5de   :  { %v593_v46 = vmul.f32 %v1084_v45, %v591_v39  ;;  %vm598_vm3 = vweird.f32 %v1084_v45  ;;  %v1086_v54 = vpop.eup %1085 }
 0x5df   :  { %vm599_vm6 = vmor %vm597_vm4, %vm598_vm3 }
 0x5e0   :  { %v594_v47 = vsub.f32 1.0, %v593_v46 }
 0x5e2   :  { %v595_v49 = vmul.f32 %v1084_v45, %v594_v47 }
 0x5e4   :  { %v596_v51 = vadd.f32 %v1084_v45, %v595_v49 }
 0x5e6   :  { %v600_v53 = vsel %vm599_vm6, %v1084_v45, %v596_v51 }
 0x5e7   :  { %v605_v55 = vsel %vm602_vm7, %v604_v52, %v600_v53 }
 0x5e8   :  { %v607_v56 = vsel %vm1346_vm5, %v1086_v54, %v605_v55 }
 0x5e9   :  { %610 = vrot.lane.b32.xlu0 %v607_v56, %s1284_s23  ;;  %v608_v3 = vmul.f32 0.0, %v607_v56 }
 0x633   :  { %v304_v57 = vpop.permute.xlu2 %303 }
 0x634   :  { %v306_v58 = vmul.f32 %v304_v57, %v300_v44 }
 0x636   :  { %308 = vrot.lane.b32.xlu1 %v306_v58, %s1293_s2 }
 0x65b   :  { %v611_v59 = vpop.permute.xlu0 %610 }
 0x65c   :  { %v613_v60 = vmul.f32 %v611_v59, %v607_v56 }
 0x65e   :  { %615 = vrot.lane.b32.xlu2 %v613_v60, %s1293_s2 }
 0x6a8   :  { %v309_v62 = vpop.permute.xlu1 %308 }
 0x6a9   :  { %v1420_v63 = vadd.f32 %v309_v62, %v301_v61 }
 0x6ab   :  { %1087 = vtanh.f32 %v1420_v63 }
 0x6b1   :  { %v1088_v1 = vpop.eup %1087 }
 0x6b2   :  { %314 = vrot.lane.b32.xlu0 %v1088_v1, %s1284_s23 }
 0x6b8   :  { %v616_v4 = vpop.permute.xlu2 %615 }
 0x6b9   :  { %v1424_v5 = vadd.f32 %v616_v4, %v608_v3 }
 0x6ba   :  { %252 = vrot.lane.b32.xlu0 %v1371_v6, %s1293_s2  ;;  %v325_v6 = vld [vmem:[#allocation3 + $0x18] sm:$0xff] }
 0x6bb   :  { %1089 = vtanh.f32 %v1424_v5 }
 0x6c1   :  { %v1090_v11 = vpop.eup %1089 }
 0x6c2   :  { %621 = vrot.lane.b32.xlu1 %v1090_v11, %s1284_s23 }
 0x724   :  { %v315_v2 = vpop.permute.xlu0 %314 }
 0x725   :  { %v1430_v12 = vmul.f32 %v315_v2, %v300_v44 }
 0x727   :  { %326 = vrot.lane.b32.xlu2 %v1430_v12, %s1284_s23 }
 0x72c   :  { %v253_v13 = vpop.permute.xlu0 %252 }
 0x72d   :  { %256 = vst.msk [vmem:[#allocation2 + $0x8] sm:$0xff] %vm100_vm0, %v253_v13 }
 0x734   :  { %v622_v14 = vpop.permute.xlu1 %621  ;;  %v630_v19 = vld [vmem:[#allocation2 + $0x8] sm:$0xff] }
 0x735   :  { %v1435_v15 = vmul.f32 %v622_v14, %v607_v56 }
 0x737   :  { %631 = vrot.lane.b32.xlu1 %v1435_v15, %s1284_s23 }
 0x781   :  { %v327_v16 = vpop.permute.xlu2 %326 }
 0x782   :  { %v329_v17 = vsel %vm100_vm0, %v325_v6, %v327_v16 }
 0x783   :  { %v330_v18 = vpack.c.bf16 %v329_v17, %v329_v17 }
 0x785   :  { %1003 = vmatmul.msk.bf16.vlgmr.msra.gmra.mxu3 %vm130_vm1, %v330_v18 }
 0x786   :  { %907 = vmatpush.bf16.msra.mxu3 %v1375_v7 }
 0x78a   :  { %908 = vmatpush.bf16.msra.mxu3 %v1378_v8 }
 0x78e   :  { %909 = vmatpush.bf16.msra.mxu3 %v1384_v0 }
 0x792   :  { %910 = vmatpush.bf16.msra.mxu3 %v1390_v10 }
 0x7a9   :  { %v632_v20 = vpop.permute.xlu1 %631 }
 0x7aa   :  { %v634_v21 = vsel %vm100_vm0, %v630_v19, %v632_v20 }
 0x7ab   :  { %v635_v22 = vpack.c.bf16 %v634_v21, %v634_v21 }
 0x7ad   :  { %1027 = vmatmul.msk.bf16.vlgmr.msrb.gmra.mxu3 %vm130_vm1, %v635_v22 }
 0x808   :  { %v343_v23 = vpop.f32.mrf.mxu3 }
 0x809   :  { %v344_v25 = vadd.f32 %v1343_v9, %v343_v23 }
 0x80b   :  { %v1004_v27 = vmul.f32 -1.442695, %v344_v25 }
 0x80d   :  { %1091 = vpow2.f32 %v1004_v27 }
 0x810   :  { %v345_v28 = vpop.f32.mrf.mxu3 }
 0x813   :  { %v1092_v7 = vpop.eup %1091 }
 0x814   :  { %v351_v29 = vadd.f32 1.0, %v1092_v7 }
 0x816   :  { %1093 = vrcp.f32 %v351_v29  ;;  %v363_v10 = vand.u32 2147483648, %v351_v29  ;;  %v361_v32 = vand.u32 2147483647, %v351_v29  ;;  %vm357_vm9 = vweird.f32 %v351_v29 }
 0x817   :  { %1095 = vtanh.f32 %v344_v25 }
 0x818   :  { %v364_v34 = vor.u32 1.1754944e-38, %v363_v10  ;;  %vm362_vm11 = vcmp.eq.f32.partialorder %v361_v32, 8.507059e+37 }
 0x81c   :  { %v1094_v8 = vpop.eup %1093 }
 0x81d   :  { %v353_v0 = vmul.f32 %v1094_v8, %v351_v29  ;;  %vm358_vm8 = vweird.f32 %v1094_v8  ;;  %v1096_v36 = vpop.eup %1095 }
 0x81e   :  { %vm359_vm10 = vmor %vm357_vm9, %vm358_vm8 }
 0x81f   :  { %v354_v30 = vsub.f32 1.0, %v353_v0 }
 0x821   :  { %v355_v31 = vmul.f32 %v1094_v8, %v354_v30 }
 0x823   :  { %v356_v33 = vadd.f32 %v1094_v8, %v355_v31 }
 0x825   :  { %v360_v35 = vsel %vm359_vm10, %v1094_v8, %v356_v33 }
 0x826   :  { %v365_v37 = vsel %vm362_vm11, %v364_v34, %v360_v35 }
 0x827   :  { %v367_v38 = vsel %vm1346_vm5, %v1096_v36, %v365_v37 }
 0x828   :  { %370 = vrot.lane.b32.xlu2 %v367_v38, %s1284_s23  ;;  %v368_v61 = vmul.f32 %v367_v38, %v1420_v63 }
 0x830   :  { %v648_v39 = vpop.f32.mrf.mxu3 }
 0x831   :  { %v649_v40 = vadd.f32 %v1408_v26, %v648_v39 }
 0x833   :  { %v1028_v41 = vmul.f32 -1.442695, %v649_v40 }
 0x835   :  { %1097 = vpow2.f32 %v1028_v41 }
 0x838   :  { %v650_v42 = vpop.f32.mrf.mxu3 }
 0x83b   :  { %v1098_v43 = vpop.eup %1097 }
 0x83c   :  { %v656_v44 = vadd.f32 1.0, %v1098_v43 }
 0x83e   :  { %1099 = vrcp.f32 %v656_v44  ;;  %v668_v48 = vand.u32 2147483648, %v656_v44  ;;  %v666_v50 = vand.u32 2147483647, %v656_v44  ;;  %vm662_vm13 = vweird.f32 %v656_v44 }
 0x83f   :  { %1101 = vtanh.f32 %v649_v40 }
 0x840   :  { %v669_v52 = vor.u32 1.1754944e-38, %v668_v48  ;;  %vm667_vm15 = vcmp.eq.f32.partialorder %v666_v50, 8.507059e+37 }
 0x844   :  { %v1100_v45 = vpop.eup %1099 }
 0x845   :  { %v658_v46 = vmul.f32 %v1100_v45, %v656_v44  ;;  %vm663_vm12 = vweird.f32 %v1100_v45  ;;  %v1102_v54 = vpop.eup %1101 }
 0x846   :  { %vm664_vm14 = vmor %vm662_vm13, %vm663_vm12 }
 0x847   :  { %v659_v47 = vsub.f32 1.0, %v658_v46 }
 0x849   :  { %v660_v49 = vmul.f32 %v1100_v45, %v659_v47 }
 0x84b   :  { %v661_v51 = vadd.f32 %v1100_v45, %v660_v49 }
 0x84d   :  { %v665_v53 = vsel %vm664_vm14, %v1100_v45, %v661_v51 }
 0x84e   :  { %v670_v55 = vsel %vm667_vm15, %v669_v52, %v665_v53 }
 0x84f   :  { %v672_v56 = vsel %vm1346_vm5, %v1102_v54, %v670_v55 }
 0x850   :  { %675 = vrot.lane.b32.xlu0 %v672_v56, %s1284_s23  ;;  %v673_v4 = vmul.f32 %v672_v56, %v1424_v5  ;;  %v392_v5 = vld [vmem:[#allocation3 + $0x20] sm:$0xff] }
 0x882   :  { %v371_v57 = vpop.permute.xlu2 %370 }
 0x883   :  { %v373_v58 = vmul.f32 %v371_v57, %v367_v38 }
 0x885   :  { %375 = vrot.lane.b32.xlu1 %v373_v58, %s1293_s2 }
 0x8c2   :  { %v676_v59 = vpop.permute.xlu0 %675 }
 0x8c3   :  { %v678_v60 = vmul.f32 %v676_v59, %v672_v56 }
 0x8c5   :  { %680 = vrot.lane.b32.xlu2 %v678_v60, %s1293_s2 }
 0x8f7   :  { %v376_v62 = vpop.permute.xlu1 %375 }
 0x8f8   :  { %v1458_v1 = vadd.f32 %v376_v62, %v368_v61 }
 0x8fa   :  { %1103 = vtanh.f32 %v1458_v1 }
 0x900   :  { %v1104_v3 = vpop.eup %1103 }
 0x901   :  { %381 = vrot.lane.b32.xlu0 %v1104_v3, %s1284_s23 }
 0x909   :  { %319 = vrot.lane.b32.xlu0 %v1430_v12, %s1293_s2 }
 0x91f   :  { %v681_v11 = vpop.permute.xlu2 %680 }
 0x920   :  { %v1465_v2 = vadd.f32 %v681_v11, %v673_v4 }
 0x922   :  { %1105 = vtanh.f32 %v1465_v2 }
 0x928   :  { %v1106_v13 = vpop.eup %1105 }
 0x929   :  { %686 = vrot.lane.b32.xlu1 %v1106_v13, %s1284_s23 }
 0x973   :  { %v382_v63 = vpop.permute.xlu0 %381 }
 0x974   :  { %v1469_v14 = vmul.f32 %v382_v63, %v367_v38 }
 0x976   :  { %393 = vrot.lane.b32.xlu2 %v1469_v14, %s1284_s23 }
 0x97b   :  { %v320_v6 = vpop.permute.xlu0 %319 }
 0x97c   :  { %323 = vst.msk [vmem:[#allocation2 + $0x10] sm:$0xff] %vm100_vm0, %v320_v6 }
 0x983   :  { %v696_v20 = vld [vmem:[#allocation2 + $0x10] sm:$0xff] }
 0x99b   :  { %v687_v12 = vpop.permute.xlu1 %686 }
 0x99c   :  { %v1474_v16 = vmul.f32 %v687_v12, %v672_v56 }
 0x99e   :  { %697 = vrot.lane.b32.xlu1 %v1474_v16, %s1284_s23 }
 0x9d0   :  { %v394_v17 = vpop.permute.xlu2 %393 }
 0x9d1   :  { %v396_v18 = vsel %vm100_vm0, %v392_v5, %v394_v17 }
 0x9d2   :  { %v397_v19 = vpack.c.bf16 %v396_v18, %v396_v18 }
 0x9d4   :  { %1005 = vmatmul.msk.bf16.vlgmr.msrb.gmra.mxu0 %vm130_vm1, %v397_v19 }
 0xa10   :  { %v698_v21 = vpop.permute.xlu1 %697 }
 0xa11   :  { %v700_v22 = vsel %vm100_vm0, %v696_v20, %v698_v21 }
 0xa12   :  { %v701_v23 = vpack.c.bf16 %v700_v22, %v700_v22 }
 0xa14   :  { %1029 = vmatmul.msk.bf16.vlgmr.msra.gmra.mxu0 %vm130_vm1, %v701_v23 }
 0xa51   :  { %v410_v25 = vpop.f32.mrf.mxu0 }
 0xa52   :  { %v411_v27 = vadd.f32 %v1343_v9, %v410_v25 }
 0xa54   :  { %v1006_v28 = vmul.f32 -1.442695, %v411_v27 }
 0xa56   :  { %1107 = vpow2.f32 %v1006_v28 }
 0xa59   :  { %v412_v7 = vpop.f32.mrf.mxu0 }
 0xa5c   :  { %v1108_v29 = vpop.eup %1107 }
 0xa5d   :  { %v418_v8 = vadd.f32 1.0, %v1108_v29 }
 0xa5f   :  { %1109 = vrcp.f32 %v418_v8  ;;  %v430_v31 = vand.u32 2147483648, %v418_v8  ;;  %v428_v33 = vand.u32 2147483647, %v418_v8  ;;  %vm424_vm3 = vweird.f32 %v418_v8 }
 0xa60   :  { %1111 = vtanh.f32 %v411_v27 }
 0xa61   :  { %v431_v35 = vor.u32 1.1754944e-38, %v430_v31  ;;  %vm429_vm6 = vcmp.eq.f32.partialorder %v428_v33, 8.507059e+37 }
 0xa65   :  { %v1110_v0 = vpop.eup %1109 }
 0xa66   :  { %v420_v30 = vmul.f32 %v1110_v0, %v418_v8  ;;  %vm425_vm2 = vweird.f32 %v1110_v0  ;;  %v1112_v37 = vpop.eup %1111 }
 0xa67   :  { %vm426_vm4 = vmor %vm424_vm3, %vm425_vm2 }
 0xa68   :  { %v421_v10 = vsub.f32 1.0, %v420_v30 }
 0xa6a   :  { %v422_v32 = vmul.f32 %v1110_v0, %v421_v10 }
 0xa6c   :  { %v423_v34 = vadd.f32 %v1110_v0, %v422_v32 }
 0xa6e   :  { %v427_v36 = vsel %vm426_vm4, %v1110_v0, %v423_v34 }
 0xa6f   :  { %v432_v38 = vsel %vm429_vm6, %v431_v35, %v427_v36 }
 0xa70   :  { %v434_v39 = vsel %vm1346_vm5, %v1112_v37, %v432_v38 }
 0xa71   :  { %437 = vrot.lane.b32.xlu2 %v434_v39, %s1284_s23  ;;  %v435_v62 = vmul.f32 %v434_v39, %v1458_v1 }
 0xa91   :  { %v714_v40 = vpop.f32.mrf.mxu0 }
 0xa92   :  { %v715_v41 = vadd.f32 %v1408_v26, %v714_v40 }
 0xa94   :  { %v1030_v42 = vmul.f32 -1.442695, %v715_v41 }
 0xa96   :  { %1113 = vpow2.f32 %v1030_v42 }
 0xa99   :  { %v716_v43 = vpop.f32.mrf.mxu0 }
 0xa9c   :  { %v1114_v44 = vpop.eup %1113 }
 0xa9d   :  { %v722_v45 = vadd.f32 1.0, %v1114_v44 }
 0xa9f   :  { %1115 = vrcp.f32 %v722_v45  ;;  %v734_v49 = vand.u32 2147483648, %v722_v45  ;;  %v732_v51 = vand.u32 2147483647, %v722_v45  ;;  %vm728_vm8 = vweird.f32 %v722_v45 }
 0xaa0   :  { %1117 = vtanh.f32 %v715_v41 }
 0xaa1   :  { %v735_v53 = vor.u32 1.1754944e-38, %v734_v49  ;;  %vm733_vm10 = vcmp.eq.f32.partialorder %v732_v51, 8.507059e+37 }
 0xaa5   :  { %v1116_v46 = vpop.eup %1115 }
 0xaa6   :  { %v724_v47 = vmul.f32 %v1116_v46, %v722_v45  ;;  %vm729_vm7 = vweird.f32 %v1116_v46  ;;  %v1118_v55 = vpop.eup %1117 }
 0xaa7   :  { %vm730_vm9 = vmor %vm728_vm8, %vm729_vm7 }
 0xaa8   :  { %v725_v48 = vsub.f32 1.0, %v724_v47 }
 0xaaa   :  { %v726_v50 = vmul.f32 %v1116_v46, %v725_v48 }
 0xaac   :  { %v727_v52 = vadd.f32 %v1116_v46, %v726_v50 }
 0xaae   :  { %v731_v54 = vsel %vm730_vm9, %v1116_v46, %v727_v52 }
 0xaaf   :  { %v736_v56 = vsel %vm733_vm10, %v735_v53, %v731_v54 }
 0xab0   :  { %v738_v57 = vsel %vm1346_vm5, %v1118_v55, %v736_v56 }
 0xab1   :  { %741 = vrot.lane.b32.xlu0 %v738_v57, %s1284_s23  ;;  %v739_v13 = vmul.f32 %v738_v57, %v1465_v2  ;;  %v459_v2 = vld [vmem:[#allocation3 + $0x28] sm:$0xff] }
 0xacb   :  { %v438_v58 = vpop.permute.xlu2 %437 }
 0xacc   :  { %v440_v59 = vmul.f32 %v438_v58, %v434_v39 }
 0xace   :  { %442 = vrot.lane.b32.xlu1 %v440_v59, %s1293_s2 }
 0xb23   :  { %v742_v60 = vpop.permute.xlu0 %741 }
 0xb24   :  { %v744_v61 = vmul.f32 %v742_v60, %v738_v57 }
 0xb26   :  { %746 = vrot.lane.b32.xlu2 %v744_v61, %s1293_s2 }
 0xb40   :  { %v443_v3 = vpop.permute.xlu1 %442 }
 0xb41   :  { %v1493_v4 = vadd.f32 %v443_v3, %v435_v62 }
 0xb43   :  { %1119 = vtanh.f32 %v1493_v4 }
 0xb49   :  { %v1120_v11 = vpop.eup %1119 }
 0xb4a   :  { %448 = vrot.lane.b32.xlu0 %v1120_v11, %s1284_s23 }
 0xb52   :  { %386 = vrot.lane.b32.xlu0 %v1469_v14, %s1293_s2 }
 0xb80   :  { %v747_v63 = vpop.permute.xlu2 %746 }
 0xb81   :  { %v1500_v6 = vadd.f32 %v747_v63, %v739_v13 }
 0xb83   :  { %1121 = vtanh.f32 %v1500_v6 }
 0xb89   :  { %v1122_v12 = vpop.eup %1121 }
 0xb8a   :  { %752 = vrot.lane.b32.xlu1 %v1122_v12, %s1284_s23 }
 0xbbc   :  { %v449_v1 = vpop.permute.xlu0 %448 }
 0xbbd   :  { %v451_v5 = vmul.f32 %v449_v1, %v434_v39 }
 0xbbf   :  { %460 = vrot.lane.b32.xlu2 %v451_v5, %s1284_s23 }
 0xbc4   :  { %v387_v17 = vpop.permute.xlu0 %386 }
 0xbc5   :  { %390 = vst.msk [vmem:[#allocation2 + $0x18] sm:$0xff] %vm100_vm0, %v387_v17 }
 0xbcc   :  { %v762_v22 = vld [vmem:[#allocation2 + $0x18] sm:$0xff] }
 0xbfc   :  { %v753_v18 = vpop.permute.xlu1 %752 }
 0xbfd   :  { %v1506_v19 = vmul.f32 %v753_v18, %v738_v57 }
 0xbff   :  { %763 = vrot.lane.b32.xlu1 %v1506_v19, %s1284_s23 }
 0xc19   :  { %v461_v14 = vpop.permute.xlu2 %460 }
 0xc1a   :  { %v463_v20 = vsel %vm100_vm0, %v459_v2, %v461_v14 }
 0xc1b   :  { %v464_v21 = vpack.c.bf16 %v463_v20, %v463_v20 }
 0xc1d   :  { %1007 = vmatmul.msk.bf16.vlgmr.msrb.gmra.mxu1 %vm130_vm1, %v464_v21 }
 0xc71   :  { %v764_v23 = vpop.permute.xlu1 %763 }
 0xc72   :  { %v766_v25 = vsel %vm100_vm0, %v762_v22, %v764_v23 }
 0xc73   :  { %v767_v27 = vpack.c.bf16 %v766_v25, %v766_v25 }
 0xc75   :  { %1031 = vmatmul.msk.bf16.vlgmr.msra.gmra.mxu1 %vm130_vm1, %v767_v27 }
 0xc9a   :  { %v477_v28 = vpop.f32.mrf.mxu1 }
 0xc9b   :  { %v478_v47 = vadd.f32 %v1343_v9, %v477_v28 }
 0xc9d   :  { %v1008_v48 = vmul.f32 -1.442695, %v478_v47 }
 0xca2   :  { %v479_v7 = vpop.f32.mrf.mxu1 }
 0xcf2   :  { %v780_v29 = vpop.f32.mrf.mxu1 }
 0xcf3   :  { %v781_v8 = vadd.f32 %v1408_v26, %v780_v29 }
 0xcf5   :  { %v1032_v0 = vmul.f32 -1.442695, %v781_v8 }
 0xcf7   :  { %1123 = vpow2.f32 %v1032_v0 }
 0xcfa   :  { %v782_v30 = vpop.f32.mrf.mxu1 }
 0xcfd   :  { %v1124_v10 = vpop.eup %1123 }
 0xcfe   :  { %v788_v31 = vadd.f32 1.0, %v1124_v10 }
 0xd00   :  { %1125 = vrcp.f32 %v788_v31  ;;  %v800_v35 = vand.u32 2147483648, %v788_v31  ;;  %v798_v37 = vand.u32 2147483647, %v788_v31  ;;  %vm794_vm12 = vweird.f32 %v788_v31 }
 0xd01   :  { %1127 = vtanh.f32 %v781_v8 }
 0xd02   :  { %v801_v39 = vor.u32 1.1754944e-38, %v800_v35  ;;  %vm799_vm14 = vcmp.eq.f32.partialorder %v798_v37, 8.507059e+37  ;;  %1129 = vpow2.f32 %v1008_v48 }
 0xd06   :  { %v1126_v32 = vpop.eup %1125 }
 0xd07   :  { %v790_v33 = vmul.f32 %v1126_v32, %v788_v31  ;;  %vm795_vm11 = vweird.f32 %v1126_v32  ;;  %v1128_v41 = vpop.eup %1127 }
 0xd08   :  { %vm796_vm13 = vmor %vm794_vm12, %vm795_vm11  ;;  %v1130_v49 = vpop.eup %1129 }
 0xd09   :  { %v791_v34 = vsub.f32 1.0, %v790_v33  ;;  %v485_v50 = vadd.f32 1.0, %v1130_v49 }
 0xd0b   :  { %v792_v36 = vmul.f32 %v1126_v32, %v791_v34  ;;  %1131 = vrcp.f32 %v485_v50  ;;  %v497_v59 = vand.u32 2147483648, %v485_v50  ;;  %vm491_vm2 = vweird.f32 %v485_v50 }
 0xd0c   :  { %v495_v60 = vand.u32 2147483647, %v485_v50 }
 0xd0d   :  { %v793_v38 = vadd.f32 %v1126_v32, %v792_v36  ;;  %v498_v62 = vor.u32 1.1754944e-38, %v497_v59 }
 0xd0e   :  { %vm496_vm4 = vcmp.eq.f32.partialorder %v495_v60, 8.507059e+37 }
 0xd0f   :  { %v797_v40 = vsel %vm796_vm13, %v1126_v32, %v793_v38 }
 0xd10   :  { %v802_v42 = vsel %vm799_vm14, %v801_v39, %v797_v40 }
 0xd11   :  { %v804_v43 = vsel %vm1346_vm5, %v1128_v41, %v802_v42  ;;  %v1132_v51 = vpop.eup %1131 }
 0xd12   :  { %807 = vrot.lane.b32.xlu2 %v804_v43, %s1284_s23  ;;  %v487_v52 = vmul.f32 %v1132_v51, %v485_v50  ;;  %v805_v53 = vmul.f32 %v804_v43, %v1500_v6  ;;  %vm492_vm15 = vweird.f32 %v1132_v51 }
 0xd13   :  { %vm493_vm3 = vmor %vm491_vm2, %vm492_vm15 }
 0xd14   :  { %v488_v54 = vsub.f32 1.0, %v487_v52 }
 0xd16   :  { %v489_v57 = vmul.f32 %v1132_v51, %v488_v54 }
 0xd18   :  { %v490_v58 = vadd.f32 %v1132_v51, %v489_v57 }
 0xd1a   :  { %453 = vrot.lane.b32.xlu2 %v451_v5, %s1293_s2  ;;  %v494_v61 = vsel %vm493_vm3, %v1132_v51, %v490_v58 }
 0xd1b   :  { %v499_v3 = vsel %vm496_vm4, %v498_v62, %v494_v61 }
 0xd6c   :  { %v808_v44 = vpop.permute.xlu2 %807 }
 0xd6d   :  { %v810_v45 = vmul.f32 %v808_v44, %v804_v43 }
 0xd6f   :  { %812 = vrot.lane.b32.xlu0 %v810_v45, %s1293_s2 }
 0xd74   :  { %v454_v46 = vpop.permute.xlu2 %453 }
 0xd75   :  { %457 = vst.msk [vmem:[#allocation2 + $0x20] sm:$0xff] %vm100_vm0, %v454_v46 }
 0xd7c   :  { %v828_v5 = vld [vmem:[#allocation2 + $0x20] sm:$0xff] }
 0xde1   :  { %v813_v55 = vpop.permute.xlu0 %812 }
 0xde2   :  { %v1523_v56 = vadd.f32 %v813_v55, %v805_v53 }
 0xde4   :  { %1133 = vtanh.f32 %v1523_v56 }
 0xde5   :  { %1135 = vtanh.f32 %v478_v47 }
 0xdea   :  { %v1134_v9 = vpop.eup %1133 }
 0xdeb   :  { %818 = vrot.lane.b32.xlu1 %v1134_v9, %s1284_s23  ;;  %v1136_v11 = vpop.eup %1135 }
 0xdec   :  { %v501_v13 = vsel %vm1346_vm5, %v1136_v11, %v499_v3 }
 0xded   :  { %v502_v10 = vmul.f32 %v501_v13, %v1493_v4 }
 0xdf3   :  { %504 = vrot.lane.b32.xlu1 %v501_v13, %s1284_s23 }
 0xe5d   :  { %v819_v63 = vpop.permute.xlu1 %818 }
 0xe5e   :  { %v1530_v6 = vmul.f32 %v819_v63, %v804_v43 }
 0xe60   :  { %829 = vrot.lane.b32.xlu0 %v1530_v6, %s1284_s23 }
 0xe65   :  { %v505_v12 = vpop.permute.xlu1 %504 }
 0xe66   :  { %v507_v1 = vmul.f32 %v505_v12, %v501_v13 }
 0xe68   :  { %509 = vrot.lane.b32.xlu0 %v507_v1, %s1293_s2 }
 0xed2   :  { %v830_v17 = vpop.permute.xlu0 %829 }
 0xed3   :  { %v832_v18 = vsel %vm100_vm0, %v828_v5, %v830_v17 }
 0xed4   :  { %v833_v2 = vpack.c.bf16 %v832_v18, %v832_v18 }
 0xed6   :  { %1033 = vmatmul.msk.bf16.vlgmr.msra.gmra.mxu2 %vm130_vm1, %v833_v2 }
 0xeda   :  { %v510_v30 = vpop.permute.xlu0 %509 }
 0xedb   :  { %v512_v33 = vadd.f32 %v510_v30, %v502_v10 }
 0xf59   :  { %v846_v14 = vpop.f32.mrf.mxu2 }
 0xf5a   :  { %v847_v20 = vadd.f32 %v1408_v26, %v846_v14 }
 0xf5c   :  { %v1034_v21 = vmul.f32 -1.442695, %v847_v20 }
 0xf5e   :  { %1137 = vpow2.f32 %v1034_v21 }
 0xf61   :  { %v848_v22 = vpop.f32.mrf.mxu2 }
 0xf64   :  { %v1138_v23 = vpop.eup %1137 }
 0xf65   :  { %v854_v25 = vadd.f32 1.0, %v1138_v23 }
 0xf67   :  { %1139 = vrcp.f32 %v854_v25  ;;  %v866_v29 = vand.u32 2147483648, %v854_v25  ;;  %v864_v0 = vand.u32 2147483647, %v854_v25  ;;  %vm860_vm7 = vweird.f32 %v854_v25 }
 0xf68   :  { %1141 = vtanh.f32 %v847_v20 }
 0xf69   :  { %v867_v32 = vor.u32 1.1754944e-38, %v866_v29  ;;  %vm865_vm9 = vcmp.eq.f32.partialorder %v864_v0, 8.507059e+37  ;;  %1143 = vtanh.f32 %v512_v33 }
 0xf6d   :  { %v1140_v27 = vpop.eup %1139 }
 0xf6e   :  { %v856_v28 = vmul.f32 %v1140_v27, %v854_v25  ;;  %vm861_vm6 = vweird.f32 %v1140_v27  ;;  %v1142_v35 = vpop.eup %1141 }
 0xf6f   :  { %vm862_vm8 = vmor %vm860_vm7, %vm861_vm6  ;;  %v1144_v38 = vpop.eup %1143 }
 0xf70   :  { %v857_v7 = vsub.f32 1.0, %v856_v28 }
 0xf72   :  { %v858_v8 = vmul.f32 %v1140_v27, %v857_v7 }
 0xf74   :  { %v859_v31 = vadd.f32 %v1140_v27, %v858_v8 }
 0xf76   :  { %v863_v34 = vsel %vm862_vm8, %v1140_v27, %v859_v31 }
 0xf77   :  { %v868_v36 = vsel %vm865_vm9, %v867_v32, %v863_v34 }
 0xf78   :  { %v870_v37 = vsel %vm1346_vm5, %v1142_v35, %v868_v36 }
 0xf79   :  { %873 = vrot.lane.b32.xlu2 %v870_v37, %s1284_s23  ;;  %v871_v42 = vmul.f32 %v870_v37, %v1523_v56 }
 0xf81   :  { %515 = vrot.lane.b32.xlu2 %v1144_v38, %s1284_s23 }
 0xfd3   :  { %v874_v39 = vpop.permute.xlu2 %873 }
 0xfd4   :  { %v876_v4 = vmul.f32 %v874_v39, %v870_v37 }
 0xfd6   :  { %878 = vrot.lane.b32.xlu1 %v876_v4, %s1293_s2 }
 0xfdb   :  { %v516_v40 = vpop.permute.xlu2 %515 }
 0xfdc   :  { %v518_v41 = vmul.f32 %v516_v40, %v501_v13 }
 0xfde   :  { %520 = vrot.lane.b32.xlu1 %v518_v41, %s1293_s2 }
0x1048   :  { %v879_v43 = vpop.permute.xlu1 %878 }
0x1049   :  { %v881_v44 = vadd.f32 %v879_v43, %v871_v42 }
0x104b   :  { %1145 = vtanh.f32 %v881_v44 }
0x1050   :  { %v521_v45 = vpop.permute.xlu1 %520 }
0x1051   :  { %v1146_v46 = vpop.eup %1145  ;;  %524 = vst.msk [vmem:[#allocation2 + $0x28] sm:$0xff] %vm100_vm0, %v521_v45 }
0x1052   :  { %884 = vrot.lane.b32.xlu0 %v1146_v46, %s1284_s23 }
0x1058   :  { %v894_v50 = vld [vmem:[#allocation2 + $0x28] sm:$0xff] }
0x10c4   :  { %v885_v47 = vpop.permute.xlu0 %884 }
0x10c5   :  { %v887_v48 = vmul.f32 %v885_v47, %v870_v37 }
0x10c7   :  { %895 = vrot.lane.b32.xlu2 %v887_v48, %s1284_s23 }
0x1121   :  { %v896_v49 = vpop.permute.xlu2 %895 }
0x1122   :  { %v898_v51 = vsel %vm100_vm0, %v894_v50, %v896_v49 }
0x1123   :  { %v899_v52 = vpack.c.bf16 %v898_v51, %v898_v51 }
0x1125   :  { %1035 = vmatmul.msk.bf16.vlgmr.msra.gmra.mxu3 %vm130_vm1, %v899_v52 }
0x11a8   :  { %v912_v53 = vpop.f32.mrf.mxu3 }
0x11a9   :  { %v913_v54 = vadd.f32 %v1408_v26, %v912_v53 }
0x11ab   :  { %v1036_v55 = vmul.f32 -1.442695, %v913_v54 }
0x11ad   :  { %1147 = vpow2.f32 %v1036_v55 }
0x11b0   :  { %v914_v56 = vpop.f32.mrf.mxu3 }
0x11b3   :  { %v1148_v57 = vpop.eup %1147 }
0x11b4   :  { %v920_v58 = vadd.f32 1.0, %v1148_v57 }
0x11b6   :  { %1149 = vrcp.f32 %v920_v58  ;;  %v932_v61 = vand.u32 2147483648, %v920_v58  ;;  %v930_v3 = vand.u32 2147483647, %v920_v58  ;;  %vm926_vm11 = vweird.f32 %v920_v58 }
0x11b7   :  { %1151 = vtanh.f32 %v913_v54 }
0x11b8   :  { %v933_v13 = vor.u32 1.1754944e-38, %v932_v61  ;;  %vm931_vm12 = vcmp.eq.f32.partialorder %v930_v3, 8.507059e+37 }
0x11bc   :  { %v1150_v59 = vpop.eup %1149 }
0x11bd   :  { %v922_v9 = vmul.f32 %v1150_v59, %v920_v58  ;;  %vm927_vm10 = vweird.f32 %v1150_v59  ;;  %v1152_v26 = vpop.eup %1151 }
0x11be   :  { %vm928_vm1 = vmor %vm926_vm11, %vm927_vm10 }
0x11bf   :  { %v923_v60 = vsub.f32 1.0, %v922_v9 }
0x11c1   :  { %v924_v62 = vmul.f32 %v1150_v59, %v923_v60 }
0x11c3   :  { %v925_v11 = vadd.f32 %v1150_v59, %v924_v62 }
0x11c5   :  { %v929_v63 = vsel %vm928_vm1, %v1150_v59, %v925_v11 }
0x11c6   :  { %v934_v12 = vsel %vm931_vm12, %v933_v13, %v929_v63 }
0x11c7   :  { %v936_v1 = vsel %vm1346_vm5, %v1152_v26, %v934_v12 }
0x11c8   :  { %939 = vrot.lane.b32.xlu0 %v936_v1, %s1284_s23  ;;  %v937_v2 = vmul.f32 %v936_v1, %v881_v44 }
0x11d0   :  { %626 = vrot.lane.b32.xlu0 %v1435_v15, %s1293_s2 }
0x11d8   :  { %823 = vrot.lane.b32.xlu0 %v1530_v6, %s1293_s2 }
0x123a   :  { %v940_v5 = vpop.permute.xlu0 %939 }
0x123b   :  { %v942_v17 = vmul.f32 %v940_v5, %v936_v1 }
0x123d   :  { %944 = vrot.lane.b32.xlu1 %v942_v17, %s1293_s2 }
0x1242   :  { %v627_v18 = vpop.permute.xlu0 %626 }
0x1243   :  { %629 = vst.msk [vmem:[#allocation11] sm:$0xff] %vm100_vm0, %v627_v18 }
0x1245   :  { %691 = vrot.lane.b32.xlu1 %v1474_v16, %s1293_s2 }
0x124a   :  { %v824_v24 = vpop.permute.xlu0 %823 }
0x124b   :  { %827 = vst.msk [vmem:[#allocation11 + $0x18] sm:$0xff] %vm100_vm0, %v824_v24 }
0x124d   :  { %889 = vrot.lane.b32.xlu1 %v887_v48, %s1293_s2 }
0x12af   :  { %v945_v15 = vpop.permute.xlu1 %944 }
0x12b0   :  { %v947_v14 = vadd.f32 %v945_v15, %v937_v2 }
0x12b2   :  { %1153 = vtanh.f32 %v947_v14 }
0x12b7   :  { %v692_v6 = vpop.permute.xlu1 %691 }
0x12b8   :  { %v1154_v20 = vpop.eup %1153  ;;  %695 = vst.msk [vmem:[#allocation11 + $0x8] sm:$0xff] %vm100_vm0, %v692_v6 }
0x12b9   :  { %950 = vrot.lane.b32.xlu2 %v1154_v20, %s1284_s23 }
0x12bf   :  { %v890_v21 = vpop.permute.xlu1 %889 }
0x12c0   :  { %893 = vst.msk [vmem:[#allocation11 + $0x20] sm:$0xff] %vm100_vm0, %v890_v21 }
0x12c1   :  { %757 = vrot.lane.b32.xlu2 %v1506_v19, %s1293_s2 }
0x1313   :  { %v951_v16 = vpop.permute.xlu2 %950 }
0x1314   :  { %v953_v22 = vmul.f32 %v951_v16, %v936_v1 }
0x1316   :  { %955 = vrot.lane.b32.xlu2 %v953_v22, %s1293_s2 }
0x131b   :  { %v758_v23 = vpop.permute.xlu2 %757 }
0x131c   :  { %761 = vst.msk [vmem:[#allocation11 + $0x10] sm:$0xff] %vm100_vm0, %v758_v23 }
0x1370   :  { %v956_v25 = vpop.permute.xlu2 %955 }
0x1371   :  { %959 = vst.msk [vmem:[#allocation11 + $0x28] sm:$0xff] %vm100_vm0, %v956_v25 }
0x1372   :  { %972 = dma.vmem_to_hbm [thread:$0]  %s965_s13, 768, %s967_s16, [#allocation5], %s1287_s27, %s1287_s27, %s1288_s1  }
0x1373   :  { %1281 = dma.done.wait [#allocation5], 768  }
0x1374   :  { %1282 = vsyncadd [#allocation5], 4294966528 }
0x1375   :  { %977 = vsyncpa [#allocation4], 1 }
0x1376   :  { %978 = vsyncpa [#allocation7], 1 }
0x1377   :  { %979 = vsyncpa [#allocation10], 1 }
0x1378   :  { %980 = vsyncpa [#allocation5], 1 }

</bundles_post_ra>
